<compile_context>
chip_gen: v7x
topology: tpu7x:2x2x1
jax: 0.10.0
libtpu: 0.0.40
codegen_flags: <defaults>
</compile_context>

<pallas_src>
import functools

import jax
import jax.numpy as jnp
from jax import lax
from jax.experimental import pallas as pl
from jax.experimental.pallas import tpu as pltpu


def _round_up(v, m):
    return (v + m - 1) // m * m


def _pick_time_block(T, max_tb=16):
    tb = min(T, max_tb)
    while T % tb:
        tb -= 1
    return tb


def _pad_gate_lanes(w, H, Hp):
    """Re-pack the trailing 4*H gate axis so each gate occupies a full Hp lane block."""
    if Hp == H:
        return w
    lead = w.shape[:-1]
    w4 = w.reshape(lead + (4, H))
    pad = [(0, 0)] * len(lead) + [(0, 0), (0, Hp - H)]
    return jnp.pad(w4, pad).reshape(lead + (4 * Hp,))


# --------------------------------------------------------------------------------------
# Fused kernel: per grid step = one time chunk.
#   - batched input projection of the chunk into a VMEM scratch,
#   - unrolled recurrence over the chunk (h/c resident in VMEM scratch across steps),
#   - classifier epilogue on the last chunk (max-pool -> Linear(+BN) -> ReLU -> Linear).
# --------------------------------------------------------------------------------------
def _fused_kernel(x_ref, wih_ref, b_ref, whh_ref, w1_ref, b1_ref, w2_ref, b2_ref,
                  o_ref, h_scr, c_scr, xp_scr,
                  *, hidden_pad, tb, n, batch, players, compute_dtype):
    Hp = hidden_pad
    chunk = pl.program_id(0)

    @pl.when(chunk == 0)
    def _init():
        h_scr[...] = jnp.zeros_like(h_scr)
        c_scr[...] = jnp.zeros_like(c_scr)

    # Batched input projection for the whole time chunk: one (Tb*N, F) @ (F, 4Hp) MXU
    # matmul + folded bias (instead of Tb tiny per-step matmuls / per-step bias adds).
    feat = x_ref.shape[-1]
    xc = x_ref[...].reshape(tb * n, feat)
    xp = jnp.dot(xc, wih_ref[...], preferred_element_type=jnp.float32) + b_ref[...]
    xp_scr[...] = xp.reshape(tb, n, 4 * Hp)

    # Serial recurrence: only the H-contraction + activations remain per step.
    def step(t, carry):
        h, c = carry
        gates = xp_scr[t] + jnp.dot(h.astype(compute_dtype), whh_ref[...],
                                    preferred_element_type=jnp.float32)     # (N, 4Hp)
        # PyTorch gate order [i, f, g, o]; each slice is a full 128-lane block.
        i_g = jax.nn.sigmoid(gates[:, 0 * Hp:1 * Hp])
        f_g = jax.nn.sigmoid(gates[:, 1 * Hp:2 * Hp])
        g_g = jnp.tanh(gates[:, 2 * Hp:3 * Hp])
        o_g = jax.nn.sigmoid(gates[:, 3 * Hp:4 * Hp])
        c = f_g * c + i_g * g_g
        h = o_g * jnp.tanh(c)
        return (h, c)

    h, c = lax.fori_loop(0, tb, step, (h_scr[...], c_scr[...]), unroll=True)
    h_scr[...] = h
    c_scr[...] = c

    # Fused classifier epilogue (runs once, on the last time chunk).
    @pl.when(chunk == pl.num_programs(0) - 1)
    def _finalize():
        # Max-pool over players: one reshape + sublane reduce (rows are ordered n=b*P+p).
        pooled = jnp.max(h_scr[...].reshape(batch, players, Hp), axis=1)     # (B, Hp)
        h1 = jnp.dot(pooled.astype(compute_dtype), w1_ref[...],
                     preferred_element_type=jnp.float32) + b1_ref[...]       # BN folded
        h1 = jnp.maximum(h1, 0.0)                                            # ReLU; Dropout = identity (eval)
        logits = jnp.dot(h1.astype(compute_dtype), w2_ref[...],
                         preferred_element_type=jnp.float32) + b2_ref[...]   # (B, Cp) lane-dense
        o_ref[...] = logits.astype(o_ref.dtype)


# --------------------------------------------------------------------------------------
# Host wrapper: layout prep (raw torch-view reshape, gate-lane padding, BN fold) + one
# pallas_call.
# --------------------------------------------------------------------------------------
def baseline7_forward(x, params, *, compute_dtype=jnp.float32, max_time_block=16):
    B, T, P, F = x.shape
    H = params["w_hh_t"].shape[0]
    D = params["w1_t"].shape[1]
    C = params["w2_t"].shape[1]
    N = B * P
    Hp = _round_up(H, 128)   # lane-aligned gate blocks
    Cp = _round_up(C, 128)   # lane-dense classifier output

    # Exact reproduction of torch's x.view(B*P, T, F) on a contiguous (B,T,P,F) tensor
    # (raw row-major reshape), then time-major for clean per-chunk blocks.
    x_tnf = jnp.transpose(x.reshape(N, T, F), (1, 0, 2))                     # (T, N, F)

    # LSTM weights, re-packed so each gate occupies a full Hp lane block.
    wih_p = _pad_gate_lanes(params["w_ih_t"], H, Hp)                         # (F, 4Hp)
    whh_p = jnp.pad(_pad_gate_lanes(params["w_hh_t"], H, Hp),
                    ((0, Hp - H), (0, 0)))                                   # (Hp, 4Hp)
    b_p = _pad_gate_lanes(params["b_lstm"], H, Hp)                           # (1, 4Hp)

    # Fold eval-mode BatchNorm1d into the first Linear; pad rows/cols for Hp/Cp.
    scale = params["gamma"] * lax.rsqrt(params["running_var"] + 1e-5)        # (1, D)
    w1f = jnp.pad(params["w1_t"] * scale, ((0, Hp - H), (0, 0)))             # (Hp, D)
    b1f = (params["b1"] - params["running_mean"]) * scale + params["beta"]   # (1, D)
    w2_p = jnp.pad(params["w2_t"], ((0, 0), (0, Cp - C)))                    # (D, Cp)
    b2_p = jnp.pad(params["b2"], ((0, 0), (0, Cp - C)))                      # (1, Cp)

    # Optional bf16 matmul inputs (f32 accumulation / state kept inside the kernel).
    cd = compute_dtype
    x_tnf, wih_p, whh_p, w1f, w2_p = (a.astype(cd) for a in (x_tnf, wih_p, whh_p, w1f, w2_p))

    Tb = _pick_time_block(T, max_time_block)
    G = 4 * Hp
    kernel = functools.partial(_fused_kernel, hidden_pad=Hp, tb=Tb, n=N,
                               batch=B, players=P, compute_dtype=cd)

    out = pl.pallas_call(
        kernel,
        out_shape=jax.ShapeDtypeStruct((B, Cp), jnp.float32),
        grid=(T // Tb,),
        in_specs=[
            pl.BlockSpec((Tb, N, F), lambda c: (c, 0, 0)),   # stream x one time chunk per step
            pl.BlockSpec((F, G), lambda c: (0, 0)),          # resident input-projection weight
            pl.BlockSpec((1, G), lambda c: (0, 0)),          # resident folded LSTM bias
            pl.BlockSpec((Hp, G), lambda c: (0, 0)),         # resident recurrent weight
            pl.BlockSpec((Hp, D), lambda c: (0, 0)),         # resident classifier weights
            pl.BlockSpec((1, D), lambda c: (0, 0)),
            pl.BlockSpec((D, Cp), lambda c: (0, 0)),
            pl.BlockSpec((1, Cp), lambda c: (0, 0)),
        ],
        out_specs=pl.BlockSpec((B, Cp), lambda c: (0, 0)),   # written only on the last chunk
        scratch_shapes=[
            pltpu.VMEM((N, Hp), jnp.float32),                # h state (persists across chunks)
            pltpu.VMEM((N, Hp), jnp.float32),                # c state
            pltpu.VMEM((Tb, N, G), jnp.float32),             # per-chunk input projection
        ],
        compiler_params=pltpu.CompilerParams(dimension_semantics=("arbitrary",)),
    )(x_tnf, wih_p, b_p, whh_p, w1f, b1f, w2_p, b2_p)

    return out[:, :C]


# --------------------------------------------------------------------------------------
# Pure-JAX reference (sanity check; mirrors the PyTorch module in eval mode).
# --------------------------------------------------------------------------------------
def baseline7_reference(x, params):
    B, T, P, F = x.shape
    H = params["w_hh_t"].shape[0]
    xr = x.reshape(B * P, T, F)

    def step(carry, x_t):
        h, c = carry
        gates = x_t @ params["w_ih_t"] + h @ params["w_hh_t"] + params["b_lstm"]
        i = jax.nn.sigmoid(gates[:, 0 * H:1 * H])
        f = jax.nn.sigmoid(gates[:, 1 * H:2 * H])
        g = jnp.tanh(gates[:, 2 * H:3 * H])
        o = jax.nn.sigmoid(gates[:, 3 * H:4 * H])
        c = f * c + i * g
        h = o * jnp.tanh(c)
        return (h, c), None

    h0 = jnp.zeros((B * P, H), jnp.float32)
    (h, _), _ = lax.scan(step, (h0, h0), jnp.transpose(xr, (1, 0, 2)))
    pooled = jnp.max(h.reshape(B, P, H), axis=1)
    h1 = pooled @ params["w1_t"] + params["b1"]
    h1 = (h1 - params["running_mean"]) * lax.rsqrt(params["running_var"] + 1e-5) \
         * params["gamma"] + params["beta"]
    h1 = jnp.maximum(h1, 0.0)
    return h1 @ params["w2_t"] + params["b2"]


def make_params(key, input_size, hidden_size, num_classes):
    H, F, D, C = hidden_size, input_size, 512, num_classes
    ks = jax.random.split(key, 8)
    s = 1.0 / jnp.sqrt(H)
    w_ih = jax.random.uniform(ks[0], (4 * H, F), jnp.float32, -s, s)   # PyTorch (4H, F)
    w_hh = jax.random.uniform(ks[1], (4 * H, H), jnp.float32, -s, s)   # PyTorch (4H, H)
    b_ih = jax.random.uniform(ks[2], (4 * H,), jnp.float32, -s, s)
    b_hh = jax.random.uniform(ks[3], (4 * H,), jnp.float32, -s, s)
    s1 = 1.0 / jnp.sqrt(H)
    w1 = jax.random.uniform(ks[4], (D, H), jnp.float32, -s1, s1)       # PyTorch (512, H)
    b1 = jax.random.uniform(ks[5], (D,), jnp.float32, -s1, s1)
    s2 = 1.0 / jnp.sqrt(D)
    w2 = jax.random.uniform(ks[6], (C, D), jnp.float32, -s2, s2)       # PyTorch (C, 512)
    b2 = jax.random.uniform(ks[7], (C,), jnp.float32, -s2, s2)
    return {
        "w_ih_t": jnp.transpose(w_ih),                 # (F, 4H)
        "w_hh_t": jnp.transpose(w_hh),                 # (H, 4H)
        "b_lstm": (b_ih + b_hh).reshape(1, 4 * H),     # (1, 4H)
        "w1_t": jnp.transpose(w1),                     # (H, 512)
        "b1": b1.reshape(1, D),
        "gamma": jnp.ones((1, D), jnp.float32),
        "beta": jnp.zeros((1, D), jnp.float32),
        "running_mean": jnp.zeros((1, D), jnp.float32),
        "running_var": jnp.ones((1, D), jnp.float32),
        "w2_t": jnp.transpose(w2),                     # (512, C)
        "b2": b2.reshape(1, C),
    }


if __name__ == "__main__":
    # Small shapes consistent with the module: x is (B, num_frames, num_players, feat).
    B, T, P, F = 2, 8, 4, 16
    H, C = 32, 8

    key = jax.random.PRNGKey(0)
    kx, kp = jax.random.split(key)
    x = jax.random.normal(kx, (B, T, P, F), jnp.float32)
    params = make_params(kp, input_size=F, hidden_size=H, num_classes=C)

    ref = jax.block_until_ready(baseline7_reference(x, params))

    # f32 path (exact-ish vs reference).
    logits = jax.block_until_ready(baseline7_forward(x, params, compute_dtype=jnp.float32))
    assert logits.shape == (B, C)
    assert jnp.allclose(logits, ref, atol=1e-4, rtol=1e-4)

    # bf16 matmul-input path (v6e/v7x speed path): f32 accumulation / state, loose check.
    logits_bf16 = jax.block_until_ready(
        baseline7_forward(x, params, compute_dtype=jnp.bfloat16))
    assert logits_bf16.shape == (B, C)
    assert jnp.allclose(logits_bf16, ref, atol=2e-2, rtol=2e-2)

    print("KERNEL_OK")
</pallas_src>

<mosaic_0001>
module attributes {stable_mosaic.version = 11 : i64} {
  func.func @_fused_kernel(%arg0: i32, %arg1: memref<8x8x16xf32, #tpu.memory_space<vmem>>, %arg2: memref<16x512xf32, #tpu.memory_space<vmem>>, %arg3: memref<1x512xf32, #tpu.memory_space<vmem>>, %arg4: memref<128x512xf32, #tpu.memory_space<vmem>>, %arg5: memref<128x512xf32, #tpu.memory_space<vmem>>, %arg6: memref<1x512xf32, #tpu.memory_space<vmem>>, %arg7: memref<512x128xf32, #tpu.memory_space<vmem>>, %arg8: memref<1x128xf32, #tpu.memory_space<vmem>>, %arg9: memref<2x128xf32, #tpu.memory_space<vmem>>, %arg10: memref<8x128xf32, #tpu.memory_space<vmem>>, %arg11: memref<8x128xf32, #tpu.memory_space<vmem>>, %arg12: memref<8x8x512xf32, #tpu.memory_space<vmem>>) attributes {dimension_semantics = [#tpu.dimension_semantics<arbitrary>], iteration_bounds = array<i64: 1>, scalar_prefetch = 0 : i64, scratch_operands = 3 : i64, tpu.core_type = #tpu.core_type<tc>, window_params = [{transform_indices = @transform_0, window_bounds = array<i64: 8, 8, 16>}, {pipeline_mode = #tpu.pipeline_mode<synchronous>, transform_indices = @transform_1, window_bounds = array<i64: 16, 512>}, {pipeline_mode = #tpu.pipeline_mode<synchronous>, transform_indices = @transform_2, window_bounds = array<i64: 1, 512>}, {pipeline_mode = #tpu.pipeline_mode<synchronous>, transform_indices = @transform_3, window_bounds = array<i64: 128, 512>}, {pipeline_mode = #tpu.pipeline_mode<synchronous>, transform_indices = @transform_4, window_bounds = array<i64: 128, 512>}, {pipeline_mode = #tpu.pipeline_mode<synchronous>, transform_indices = @transform_5, window_bounds = array<i64: 1, 512>}, {pipeline_mode = #tpu.pipeline_mode<synchronous>, transform_indices = @transform_6, window_bounds = array<i64: 512, 128>}, {pipeline_mode = #tpu.pipeline_mode<synchronous>, transform_indices = @transform_7, window_bounds = array<i64: 1, 128>}, {pipeline_mode = #tpu.pipeline_mode<synchronous>, transform_indices = @transform_8, window_bounds = array<i64: 2, 128>}]} {
    %c0_i32 = arith.constant 0 : i32
    %0 = arith.cmpi eq, %arg0, %c0_i32 : i32
    %1 = arith.extui %0 : i1 to i32
    %c0_i32_0 = arith.constant 0 : i32
    %2 = arith.cmpi ne, %1, %c0_i32_0 : i32
    scf.if %2 {
      %cst_85 = arith.constant 0.000000e+00 : f32
      %267 = vector.broadcast %cst_85 : f32 to vector<8x128xf32>
      %c0_86 = arith.constant 0 : index
      %c0_87 = arith.constant 0 : index
      %268 = vector.load %arg10[%c0_86, %c0_87] : memref<8x128xf32, #tpu.memory_space<vmem>>, vector<8x128xf32>
      tpu.vector_store %arg10[%c0_86, %c0_87], %267 {strides = array<i32>} : memref<8x128xf32, #tpu.memory_space<vmem>>, vector<8x128xf32>,
      %cst_88 = arith.constant 0.000000e+00 : f32
      %269 = vector.broadcast %cst_88 : f32 to vector<8x128xf32>
      %c0_89 = arith.constant 0 : index
      %c0_90 = arith.constant 0 : index
      %270 = vector.load %arg11[%c0_89, %c0_90] : memref<8x128xf32, #tpu.memory_space<vmem>>, vector<8x128xf32>
      tpu.vector_store %arg11[%c0_89, %c0_90], %269 {strides = array<i32>} : memref<8x128xf32, #tpu.memory_space<vmem>>, vector<8x128xf32>,
    } else {
    }
    %c0 = arith.constant 0 : index
    %c0_1 = arith.constant 0 : index
    %c0_2 = arith.constant 0 : index
    %3 = vector.load %arg1[%c0, %c0_1, %c0_2] : memref<8x8x16xf32, #tpu.memory_space<vmem>>, vector<8x8x16xf32>
    %4 = vector.shape_cast %3 : vector<8x8x16xf32> to vector<64x16xf32>
    %c0_3 = arith.constant 0 : index
    %c0_4 = arith.constant 0 : index
    %5 = vector.load %arg2[%c0_3, %c0_4] : memref<16x512xf32, #tpu.memory_space<vmem>>, vector<16x512xf32>
    %cst = arith.constant dense<0.000000e+00> : vector<64x512xf32>
    %6 = tpu.matmul %4, %5, %cst {dimension_numbers = #tpu.dot_dimension_numbers<[1], [0], [0], [1], [0, 0, 1, 1], [], []>} : vector<64x16xf32>, vector<16x512xf32>, vector<64x512xf32> -> vector<64x512xf32>
    %c0_5 = arith.constant 0 : index
    %c0_6 = arith.constant 0 : index
    %7 = vector.load %arg3[%c0_5, %c0_6] : memref<1x512xf32, #tpu.memory_space<vmem>>, vector<1x512xf32>
    %8 = vector.broadcast %7 : vector<1x512xf32> to vector<64x512xf32>
    %9 = arith.addf %6, %8 : vector<64x512xf32>
    %10 = vector.shape_cast %9 : vector<64x512xf32> to vector<8x8x512xf32>
    %c0_7 = arith.constant 0 : index
    %c0_8 = arith.constant 0 : index
    %c0_9 = arith.constant 0 : index
    %11 = vector.load %arg12[%c0_7, %c0_8, %c0_9] : memref<8x8x512xf32, #tpu.memory_space<vmem>>, vector<8x8x512xf32>
    tpu.vector_store %arg12[%c0_7, %c0_8, %c0_9], %10 {strides = array<i32>} : memref<8x8x512xf32, #tpu.memory_space<vmem>>, vector<8x8x512xf32>,
    %c0_10 = arith.constant 0 : index
    %c0_11 = arith.constant 0 : index
    %12 = vector.load %arg10[%c0_10, %c0_11] : memref<8x128xf32, #tpu.memory_space<vmem>>, vector<8x128xf32>
    %c0_12 = arith.constant 0 : index
    %c0_13 = arith.constant 0 : index
    %13 = vector.load %arg11[%c0_12, %c0_13] : memref<8x128xf32, #tpu.memory_space<vmem>>, vector<8x128xf32>
    %c0_i32_14 = arith.constant 0 : i32
    %14 = arith.index_cast %c0_i32_14 : i32 to index
    %c0_15 = arith.constant 0 : index
    %c0_16 = arith.constant 0 : index
    %15 = vector.load %arg12[%14, %c0_15, %c0_16] : memref<8x8x512xf32, #tpu.memory_space<vmem>>, vector<1x8x512xf32>
    %16 = vector.shape_cast %15 : vector<1x8x512xf32> to vector<8x512xf32>
    %c0_17 = arith.constant 0 : index
    %c0_18 = arith.constant 0 : index
    %17 = vector.load %arg4[%c0_17, %c0_18] : memref<128x512xf32, #tpu.memory_space<vmem>>, vector<128x512xf32>
    %cst_19 = arith.constant dense<0.000000e+00> : vector<8x512xf32>
    %18 = tpu.matmul %12, %17, %cst_19 {dimension_numbers = #tpu.dot_dimension_numbers<[1], [0], [0], [1], [0, 0, 1, 1], [], []>} : vector<8x128xf32>, vector<128x512xf32>, vector<8x512xf32> -> vector<8x512xf32>
    %19 = arith.addf %16, %18 : vector<8x512xf32>
    %20 = vector.extract_strided_slice %19 {offsets = [0, 0], sizes = [8, 128], strides = [1, 1]} : vector<8x512xf32> to vector<8x128xf32>
    %21 = arith.negf %20 : vector<8x128xf32>
    %22 = math.exp %21 : vector<8x128xf32>
    %cst_20 = arith.constant 1.000000e+00 : f32
    %23 = vector.broadcast %cst_20 : f32 to vector<8x128xf32>
    %24 = arith.addf %23, %22 : vector<8x128xf32>
    %25 = arith.divf %23, %24 : vector<8x128xf32>
    %26 = vector.extract_strided_slice %19 {offsets = [0, 128], sizes = [8, 128], strides = [1, 1]} : vector<8x512xf32> to vector<8x128xf32>
    %27 = arith.negf %26 : vector<8x128xf32>
    %28 = math.exp %27 : vector<8x128xf32>
    %cst_21 = arith.constant 1.000000e+00 : f32
    %29 = vector.broadcast %cst_21 : f32 to vector<8x128xf32>
    %30 = arith.addf %29, %28 : vector<8x128xf32>
    %31 = arith.divf %29, %30 : vector<8x128xf32>
    %32 = vector.extract_strided_slice %19 {offsets = [0, 256], sizes = [8, 128], strides = [1, 1]} : vector<8x512xf32> to vector<8x128xf32>
    %33 = math.tanh %32 : vector<8x128xf32>
    %34 = vector.extract_strided_slice %19 {offsets = [0, 384], sizes = [8, 128], strides = [1, 1]} : vector<8x512xf32> to vector<8x128xf32>
    %35 = arith.negf %34 : vector<8x128xf32>
    %36 = math.exp %35 : vector<8x128xf32>
    %cst_22 = arith.constant 1.000000e+00 : f32
    %37 = vector.broadcast %cst_22 : f32 to vector<8x128xf32>
    %38 = arith.addf %37, %36 : vector<8x128xf32>
    %39 = arith.divf %37, %38 : vector<8x128xf32>
    %40 = arith.mulf %31, %13 : vector<8x128xf32>
    %41 = arith.mulf %25, %33 : vector<8x128xf32>
    %42 = arith.addf %40, %41 : vector<8x128xf32>
    %43 = math.tanh %42 : vector<8x128xf32>
    %44 = arith.mulf %39, %43 : vector<8x128xf32>
    %c1_i32 = arith.constant 1 : i32
    %45 = arith.index_cast %c1_i32 : i32 to index
    %c0_23 = arith.constant 0 : index
    %c0_24 = arith.constant 0 : index
    %46 = vector.load %arg12[%45, %c0_23, %c0_24] : memref<8x8x512xf32, #tpu.memory_space<vmem>>, vector<1x8x512xf32>
    %47 = vector.shape_cast %46 : vector<1x8x512xf32> to vector<8x512xf32>
    %c0_25 = arith.constant 0 : index
    %c0_26 = arith.constant 0 : index
    %48 = vector.load %arg4[%c0_25, %c0_26] : memref<128x512xf32, #tpu.memory_space<vmem>>, vector<128x512xf32>
    %cst_27 = arith.constant dense<0.000000e+00> : vector<8x512xf32>
    %49 = tpu.matmul %44, %48, %cst_27 {dimension_numbers = #tpu.dot_dimension_numbers<[1], [0], [0], [1], [0, 0, 1, 1], [], []>} : vector<8x128xf32>, vector<128x512xf32>, vector<8x512xf32> -> vector<8x512xf32>
    %50 = arith.addf %47, %49 : vector<8x512xf32>
    %51 = vector.extract_strided_slice %50 {offsets = [0, 0], sizes = [8, 128], strides = [1, 1]} : vector<8x512xf32> to vector<8x128xf32>
    %52 = arith.negf %51 : vector<8x128xf32>
    %53 = math.exp %52 : vector<8x128xf32>
    %cst_28 = arith.constant 1.000000e+00 : f32
    %54 = vector.broadcast %cst_28 : f32 to vector<8x128xf32>
    %55 = arith.addf %54, %53 : vector<8x128xf32>
    %56 = arith.divf %54, %55 : vector<8x128xf32>
    %57 = vector.extract_strided_slice %50 {offsets = [0, 128], sizes = [8, 128], strides = [1, 1]} : vector<8x512xf32> to vector<8x128xf32>
    %58 = arith.negf %57 : vector<8x128xf32>
    %59 = math.exp %58 : vector<8x128xf32>
    %cst_29 = arith.constant 1.000000e+00 : f32
    %60 = vector.broadcast %cst_29 : f32 to vector<8x128xf32>
    %61 = arith.addf %60, %59 : vector<8x128xf32>
    %62 = arith.divf %60, %61 : vector<8x128xf32>
    %63 = vector.extract_strided_slice %50 {offsets = [0, 256], sizes = [8, 128], strides = [1, 1]} : vector<8x512xf32> to vector<8x128xf32>
    %64 = math.tanh %63 : vector<8x128xf32>
    %65 = vector.extract_strided_slice %50 {offsets = [0, 384], sizes = [8, 128], strides = [1, 1]} : vector<8x512xf32> to vector<8x128xf32>
    %66 = arith.negf %65 : vector<8x128xf32>
    %67 = math.exp %66 : vector<8x128xf32>
    %cst_30 = arith.constant 1.000000e+00 : f32
    %68 = vector.broadcast %cst_30 : f32 to vector<8x128xf32>
    %69 = arith.addf %68, %67 : vector<8x128xf32>
    %70 = arith.divf %68, %69 : vector<8x128xf32>
    %71 = arith.mulf %62, %42 : vector<8x128xf32>
    %72 = arith.mulf %56, %64 : vector<8x128xf32>
    %73 = arith.addf %71, %72 : vector<8x128xf32>
    %74 = math.tanh %73 : vector<8x128xf32>
    %75 = arith.mulf %70, %74 : vector<8x128xf32>
    %c2_i32 = arith.constant 2 : i32
    %76 = arith.index_cast %c2_i32 : i32 to index
    %c0_31 = arith.constant 0 : index
    %c0_32 = arith.constant 0 : index
    %77 = vector.load %arg12[%76, %c0_31, %c0_32] : memref<8x8x512xf32, #tpu.memory_space<vmem>>, vector<1x8x512xf32>
    %78 = vector.shape_cast %77 : vector<1x8x512xf32> to vector<8x512xf32>
    %c0_33 = arith.constant 0 : index
    %c0_34 = arith.constant 0 : index
    %79 = vector.load %arg4[%c0_33, %c0_34] : memref<128x512xf32, #tpu.memory_space<vmem>>, vector<128x512xf32>
    %cst_35 = arith.constant dense<0.000000e+00> : vector<8x512xf32>
    %80 = tpu.matmul %75, %79, %cst_35 {dimension_numbers = #tpu.dot_dimension_numbers<[1], [0], [0], [1], [0, 0, 1, 1], [], []>} : vector<8x128xf32>, vector<128x512xf32>, vector<8x512xf32> -> vector<8x512xf32>
    %81 = arith.addf %78, %80 : vector<8x512xf32>
    %82 = vector.extract_strided_slice %81 {offsets = [0, 0], sizes = [8, 128], strides = [1, 1]} : vector<8x512xf32> to vector<8x128xf32>
    %83 = arith.negf %82 : vector<8x128xf32>
    %84 = math.exp %83 : vector<8x128xf32>
    %cst_36 = arith.constant 1.000000e+00 : f32
    %85 = vector.broadcast %cst_36 : f32 to vector<8x128xf32>
    %86 = arith.addf %85, %84 : vector<8x128xf32>
    %87 = arith.divf %85, %86 : vector<8x128xf32>
    %88 = vector.extract_strided_slice %81 {offsets = [0, 128], sizes = [8, 128], strides = [1, 1]} : vector<8x512xf32> to vector<8x128xf32>
    %89 = arith.negf %88 : vector<8x128xf32>
    %90 = math.exp %89 : vector<8x128xf32>
    %cst_37 = arith.constant 1.000000e+00 : f32
    %91 = vector.broadcast %cst_37 : f32 to vector<8x128xf32>
    %92 = arith.addf %91, %90 : vector<8x128xf32>
    %93 = arith.divf %91, %92 : vector<8x128xf32>
    %94 = vector.extract_strided_slice %81 {offsets = [0, 256], sizes = [8, 128], strides = [1, 1]} : vector<8x512xf32> to vector<8x128xf32>
    %95 = math.tanh %94 : vector<8x128xf32>
    %96 = vector.extract_strided_slice %81 {offsets = [0, 384], sizes = [8, 128], strides = [1, 1]} : vector<8x512xf32> to vector<8x128xf32>
    %97 = arith.negf %96 : vector<8x128xf32>
    %98 = math.exp %97 : vector<8x128xf32>
    %cst_38 = arith.constant 1.000000e+00 : f32
    %99 = vector.broadcast %cst_38 : f32 to vector<8x128xf32>
    %100 = arith.addf %99, %98 : vector<8x128xf32>
    %101 = arith.divf %99, %100 : vector<8x128xf32>
    %102 = arith.mulf %93, %73 : vector<8x128xf32>
    %103 = arith.mulf %87, %95 : vector<8x128xf32>
    %104 = arith.addf %102, %103 : vector<8x128xf32>
    %105 = math.tanh %104 : vector<8x128xf32>
    %106 = arith.mulf %101, %105 : vector<8x128xf32>
    %c3_i32 = arith.constant 3 : i32
    %107 = arith.index_cast %c3_i32 : i32 to index
    %c0_39 = arith.constant 0 : index
    %c0_40 = arith.constant 0 : index
    %108 = vector.load %arg12[%107, %c0_39, %c0_40] : memref<8x8x512xf32, #tpu.memory_space<vmem>>, vector<1x8x512xf32>
    %109 = vector.shape_cast %108 : vector<1x8x512xf32> to vector<8x512xf32>
    %c0_41 = arith.constant 0 : index
    %c0_42 = arith.constant 0 : index
    %110 = vector.load %arg4[%c0_41, %c0_42] : memref<128x512xf32, #tpu.memory_space<vmem>>, vector<128x512xf32>
    %cst_43 = arith.constant dense<0.000000e+00> : vector<8x512xf32>
    %111 = tpu.matmul %106, %110, %cst_43 {dimension_numbers = #tpu.dot_dimension_numbers<[1], [0], [0], [1], [0, 0, 1, 1], [], []>} : vector<8x128xf32>, vector<128x512xf32>, vector<8x512xf32> -> vector<8x512xf32>
    %112 = arith.addf %109, %111 : vector<8x512xf32>
    %113 = vector.extract_strided_slice %112 {offsets = [0, 0], sizes = [8, 128], strides = [1, 1]} : vector<8x512xf32> to vector<8x128xf32>
    %114 = arith.negf %113 : vector<8x128xf32>
    %115 = math.exp %114 : vector<8x128xf32>
    %cst_44 = arith.constant 1.000000e+00 : f32
    %116 = vector.broadcast %cst_44 : f32 to vector<8x128xf32>
    %117 = arith.addf %116, %115 : vector<8x128xf32>
    %118 = arith.divf %116, %117 : vector<8x128xf32>
    %119 = vector.extract_strided_slice %112 {offsets = [0, 128], sizes = [8, 128], strides = [1, 1]} : vector<8x512xf32> to vector<8x128xf32>
    %120 = arith.negf %119 : vector<8x128xf32>
    %121 = math.exp %120 : vector<8x128xf32>
    %cst_45 = arith.constant 1.000000e+00 : f32
    %122 = vector.broadcast %cst_45 : f32 to vector<8x128xf32>
    %123 = arith.addf %122, %121 : vector<8x128xf32>
    %124 = arith.divf %122, %123 : vector<8x128xf32>
    %125 = vector.extract_strided_slice %112 {offsets = [0, 256], sizes = [8, 128], strides = [1, 1]} : vector<8x512xf32> to vector<8x128xf32>
    %126 = math.tanh %125 : vector<8x128xf32>
    %127 = vector.extract_strided_slice %112 {offsets = [0, 384], sizes = [8, 128], strides = [1, 1]} : vector<8x512xf32> to vector<8x128xf32>
    %128 = arith.negf %127 : vector<8x128xf32>
    %129 = math.exp %128 : vector<8x128xf32>
    %cst_46 = arith.constant 1.000000e+00 : f32
    %130 = vector.broadcast %cst_46 : f32 to vector<8x128xf32>
    %131 = arith.addf %130, %129 : vector<8x128xf32>
    %132 = arith.divf %130, %131 : vector<8x128xf32>
    %133 = arith.mulf %124, %104 : vector<8x128xf32>
    %134 = arith.mulf %118, %126 : vector<8x128xf32>
    %135 = arith.addf %133, %134 : vector<8x128xf32>
    %136 = math.tanh %135 : vector<8x128xf32>
    %137 = arith.mulf %132, %136 : vector<8x128xf32>
    %c4_i32 = arith.constant 4 : i32
    %138 = arith.index_cast %c4_i32 : i32 to index
    %c0_47 = arith.constant 0 : index
    %c0_48 = arith.constant 0 : index
    %139 = vector.load %arg12[%138, %c0_47, %c0_48] : memref<8x8x512xf32, #tpu.memory_space<vmem>>, vector<1x8x512xf32>
    %140 = vector.shape_cast %139 : vector<1x8x512xf32> to vector<8x512xf32>
    %c0_49 = arith.constant 0 : index
    %c0_50 = arith.constant 0 : index
    %141 = vector.load %arg4[%c0_49, %c0_50] : memref<128x512xf32, #tpu.memory_space<vmem>>, vector<128x512xf32>
    %cst_51 = arith.constant dense<0.000000e+00> : vector<8x512xf32>
    %142 = tpu.matmul %137, %141, %cst_51 {dimension_numbers = #tpu.dot_dimension_numbers<[1], [0], [0], [1], [0, 0, 1, 1], [], []>} : vector<8x128xf32>, vector<128x512xf32>, vector<8x512xf32> -> vector<8x512xf32>
    %143 = arith.addf %140, %142 : vector<8x512xf32>
    %144 = vector.extract_strided_slice %143 {offsets = [0, 0], sizes = [8, 128], strides = [1, 1]} : vector<8x512xf32> to vector<8x128xf32>
    %145 = arith.negf %144 : vector<8x128xf32>
    %146 = math.exp %145 : vector<8x128xf32>
    %cst_52 = arith.constant 1.000000e+00 : f32
    %147 = vector.broadcast %cst_52 : f32 to vector<8x128xf32>
    %148 = arith.addf %147, %146 : vector<8x128xf32>
    %149 = arith.divf %147, %148 : vector<8x128xf32>
    %150 = vector.extract_strided_slice %143 {offsets = [0, 128], sizes = [8, 128], strides = [1, 1]} : vector<8x512xf32> to vector<8x128xf32>
    %151 = arith.negf %150 : vector<8x128xf32>
    %152 = math.exp %151 : vector<8x128xf32>
    %cst_53 = arith.constant 1.000000e+00 : f32
    %153 = vector.broadcast %cst_53 : f32 to vector<8x128xf32>
    %154 = arith.addf %153, %152 : vector<8x128xf32>
    %155 = arith.divf %153, %154 : vector<8x128xf32>
    %156 = vector.extract_strided_slice %143 {offsets = [0, 256], sizes = [8, 128], strides = [1, 1]} : vector<8x512xf32> to vector<8x128xf32>
    %157 = math.tanh %156 : vector<8x128xf32>
    %158 = vector.extract_strided_slice %143 {offsets = [0, 384], sizes = [8, 128], strides = [1, 1]} : vector<8x512xf32> to vector<8x128xf32>
    %159 = arith.negf %158 : vector<8x128xf32>
    %160 = math.exp %159 : vector<8x128xf32>
    %cst_54 = arith.constant 1.000000e+00 : f32
    %161 = vector.broadcast %cst_54 : f32 to vector<8x128xf32>
    %162 = arith.addf %161, %160 : vector<8x128xf32>
    %163 = arith.divf %161, %162 : vector<8x128xf32>
    %164 = arith.mulf %155, %135 : vector<8x128xf32>
    %165 = arith.mulf %149, %157 : vector<8x128xf32>
    %166 = arith.addf %164, %165 : vector<8x128xf32>
    %167 = math.tanh %166 : vector<8x128xf32>
    %168 = arith.mulf %163, %167 : vector<8x128xf32>
    %c5_i32 = arith.constant 5 : i32
    %169 = arith.index_cast %c5_i32 : i32 to index
    %c0_55 = arith.constant 0 : index
    %c0_56 = arith.constant 0 : index
    %170 = vector.load %arg12[%169, %c0_55, %c0_56] : memref<8x8x512xf32, #tpu.memory_space<vmem>>, vector<1x8x512xf32>
    %171 = vector.shape_cast %170 : vector<1x8x512xf32> to vector<8x512xf32>
    %c0_57 = arith.constant 0 : index
    %c0_58 = arith.constant 0 : index
    %172 = vector.load %arg4[%c0_57, %c0_58] : memref<128x512xf32, #tpu.memory_space<vmem>>, vector<128x512xf32>
    %cst_59 = arith.constant dense<0.000000e+00> : vector<8x512xf32>
    %173 = tpu.matmul %168, %172, %cst_59 {dimension_numbers = #tpu.dot_dimension_numbers<[1], [0], [0], [1], [0, 0, 1, 1], [], []>} : vector<8x128xf32>, vector<128x512xf32>, vector<8x512xf32> -> vector<8x512xf32>
    %174 = arith.addf %171, %173 : vector<8x512xf32>
    %175 = vector.extract_strided_slice %174 {offsets = [0, 0], sizes = [8, 128], strides = [1, 1]} : vector<8x512xf32> to vector<8x128xf32>
    %176 = arith.negf %175 : vector<8x128xf32>
    %177 = math.exp %176 : vector<8x128xf32>
    %cst_60 = arith.constant 1.000000e+00 : f32
    %178 = vector.broadcast %cst_60 : f32 to vector<8x128xf32>
    %179 = arith.addf %178, %177 : vector<8x128xf32>
    %180 = arith.divf %178, %179 : vector<8x128xf32>
    %181 = vector.extract_strided_slice %174 {offsets = [0, 128], sizes = [8, 128], strides = [1, 1]} : vector<8x512xf32> to vector<8x128xf32>
    %182 = arith.negf %181 : vector<8x128xf32>
    %183 = math.exp %182 : vector<8x128xf32>
    %cst_61 = arith.constant 1.000000e+00 : f32
    %184 = vector.broadcast %cst_61 : f32 to vector<8x128xf32>
    %185 = arith.addf %184, %183 : vector<8x128xf32>
    %186 = arith.divf %184, %185 : vector<8x128xf32>
    %187 = vector.extract_strided_slice %174 {offsets = [0, 256], sizes = [8, 128], strides = [1, 1]} : vector<8x512xf32> to vector<8x128xf32>
    %188 = math.tanh %187 : vector<8x128xf32>
    %189 = vector.extract_strided_slice %174 {offsets = [0, 384], sizes = [8, 128], strides = [1, 1]} : vector<8x512xf32> to vector<8x128xf32>
    %190 = arith.negf %189 : vector<8x128xf32>
    %191 = math.exp %190 : vector<8x128xf32>
    %cst_62 = arith.constant 1.000000e+00 : f32
    %192 = vector.broadcast %cst_62 : f32 to vector<8x128xf32>
    %193 = arith.addf %192, %191 : vector<8x128xf32>
    %194 = arith.divf %192, %193 : vector<8x128xf32>
    %195 = arith.mulf %186, %166 : vector<8x128xf32>
    %196 = arith.mulf %180, %188 : vector<8x128xf32>
    %197 = arith.addf %195, %196 : vector<8x128xf32>
    %198 = math.tanh %197 : vector<8x128xf32>
    %199 = arith.mulf %194, %198 : vector<8x128xf32>
    %c6_i32 = arith.constant 6 : i32
    %200 = arith.index_cast %c6_i32 : i32 to index
    %c0_63 = arith.constant 0 : index
    %c0_64 = arith.constant 0 : index
    %201 = vector.load %arg12[%200, %c0_63, %c0_64] : memref<8x8x512xf32, #tpu.memory_space<vmem>>, vector<1x8x512xf32>
    %202 = vector.shape_cast %201 : vector<1x8x512xf32> to vector<8x512xf32>
    %c0_65 = arith.constant 0 : index
    %c0_66 = arith.constant 0 : index
    %203 = vector.load %arg4[%c0_65, %c0_66] : memref<128x512xf32, #tpu.memory_space<vmem>>, vector<128x512xf32>
    %cst_67 = arith.constant dense<0.000000e+00> : vector<8x512xf32>
    %204 = tpu.matmul %199, %203, %cst_67 {dimension_numbers = #tpu.dot_dimension_numbers<[1], [0], [0], [1], [0, 0, 1, 1], [], []>} : vector<8x128xf32>, vector<128x512xf32>, vector<8x512xf32> -> vector<8x512xf32>
    %205 = arith.addf %202, %204 : vector<8x512xf32>
    %206 = vector.extract_strided_slice %205 {offsets = [0, 0], sizes = [8, 128], strides = [1, 1]} : vector<8x512xf32> to vector<8x128xf32>
    %207 = arith.negf %206 : vector<8x128xf32>
    %208 = math.exp %207 : vector<8x128xf32>
    %cst_68 = arith.constant 1.000000e+00 : f32
    %209 = vector.broadcast %cst_68 : f32 to vector<8x128xf32>
    %210 = arith.addf %209, %208 : vector<8x128xf32>
    %211 = arith.divf %209, %210 : vector<8x128xf32>
    %212 = vector.extract_strided_slice %205 {offsets = [0, 128], sizes = [8, 128], strides = [1, 1]} : vector<8x512xf32> to vector<8x128xf32>
    %213 = arith.negf %212 : vector<8x128xf32>
    %214 = math.exp %213 : vector<8x128xf32>
    %cst_69 = arith.constant 1.000000e+00 : f32
    %215 = vector.broadcast %cst_69 : f32 to vector<8x128xf32>
    %216 = arith.addf %215, %214 : vector<8x128xf32>
    %217 = arith.divf %215, %216 : vector<8x128xf32>
    %218 = vector.extract_strided_slice %205 {offsets = [0, 256], sizes = [8, 128], strides = [1, 1]} : vector<8x512xf32> to vector<8x128xf32>
    %219 = math.tanh %218 : vector<8x128xf32>
    %220 = vector.extract_strided_slice %205 {offsets = [0, 384], sizes = [8, 128], strides = [1, 1]} : vector<8x512xf32> to vector<8x128xf32>
    %221 = arith.negf %220 : vector<8x128xf32>
    %222 = math.exp %221 : vector<8x128xf32>
    %cst_70 = arith.constant 1.000000e+00 : f32
    %223 = vector.broadcast %cst_70 : f32 to vector<8x128xf32>
    %224 = arith.addf %223, %222 : vector<8x128xf32>
    %225 = arith.divf %223, %224 : vector<8x128xf32>
    %226 = arith.mulf %217, %197 : vector<8x128xf32>
    %227 = arith.mulf %211, %219 : vector<8x128xf32>
    %228 = arith.addf %226, %227 : vector<8x128xf32>
    %229 = math.tanh %228 : vector<8x128xf32>
    %230 = arith.mulf %225, %229 : vector<8x128xf32>
    %c7_i32 = arith.constant 7 : i32
    %231 = arith.index_cast %c7_i32 : i32 to index
    %c0_71 = arith.constant 0 : index
    %c0_72 = arith.constant 0 : index
    %232 = vector.load %arg12[%231, %c0_71, %c0_72] : memref<8x8x512xf32, #tpu.memory_space<vmem>>, vector<1x8x512xf32>
    %233 = vector.shape_cast %232 : vector<1x8x512xf32> to vector<8x512xf32>
    %c0_73 = arith.constant 0 : index
    %c0_74 = arith.constant 0 : index
    %234 = vector.load %arg4[%c0_73, %c0_74] : memref<128x512xf32, #tpu.memory_space<vmem>>, vector<128x512xf32>
    %cst_75 = arith.constant dense<0.000000e+00> : vector<8x512xf32>
    %235 = tpu.matmul %230, %234, %cst_75 {dimension_numbers = #tpu.dot_dimension_numbers<[1], [0], [0], [1], [0, 0, 1, 1], [], []>} : vector<8x128xf32>, vector<128x512xf32>, vector<8x512xf32> -> vector<8x512xf32>
    %236 = arith.addf %233, %235 : vector<8x512xf32>
    %237 = vector.extract_strided_slice %236 {offsets = [0, 0], sizes = [8, 128], strides = [1, 1]} : vector<8x512xf32> to vector<8x128xf32>
    %238 = arith.negf %237 : vector<8x128xf32>
    %239 = math.exp %238 : vector<8x128xf32>
    %cst_76 = arith.constant 1.000000e+00 : f32
    %240 = vector.broadcast %cst_76 : f32 to vector<8x128xf32>
    %241 = arith.addf %240, %239 : vector<8x128xf32>
    %242 = arith.divf %240, %241 : vector<8x128xf32>
    %243 = vector.extract_strided_slice %236 {offsets = [0, 128], sizes = [8, 128], strides = [1, 1]} : vector<8x512xf32> to vector<8x128xf32>
    %244 = arith.negf %243 : vector<8x128xf32>
    %245 = math.exp %244 : vector<8x128xf32>
    %cst_77 = arith.constant 1.000000e+00 : f32
    %246 = vector.broadcast %cst_77 : f32 to vector<8x128xf32>
    %247 = arith.addf %246, %245 : vector<8x128xf32>
    %248 = arith.divf %246, %247 : vector<8x128xf32>
    %249 = vector.extract_strided_slice %236 {offsets = [0, 256], sizes = [8, 128], strides = [1, 1]} : vector<8x512xf32> to vector<8x128xf32>
    %250 = math.tanh %249 : vector<8x128xf32>
    %251 = vector.extract_strided_slice %236 {offsets = [0, 384], sizes = [8, 128], strides = [1, 1]} : vector<8x512xf32> to vector<8x128xf32>
    %252 = arith.negf %251 : vector<8x128xf32>
    %253 = math.exp %252 : vector<8x128xf32>
    %cst_78 = arith.constant 1.000000e+00 : f32
    %254 = vector.broadcast %cst_78 : f32 to vector<8x128xf32>
    %255 = arith.addf %254, %253 : vector<8x128xf32>
    %256 = arith.divf %254, %255 : vector<8x128xf32>
    %257 = arith.mulf %248, %228 : vector<8x128xf32>
    %258 = arith.mulf %242, %250 : vector<8x128xf32>
    %259 = arith.addf %257, %258 : vector<8x128xf32>
    %260 = math.tanh %259 : vector<8x128xf32>
    %261 = arith.mulf %256, %260 : vector<8x128xf32>
    %c8_i32 = arith.constant 8 : i32
    %c0_79 = arith.constant 0 : index
    %c0_80 = arith.constant 0 : index
    %262 = vector.load %arg10[%c0_79, %c0_80] : memref<8x128xf32, #tpu.memory_space<vmem>>, vector<8x128xf32>
    tpu.vector_store %arg10[%c0_79, %c0_80], %261 {strides = array<i32>} : memref<8x128xf32, #tpu.memory_space<vmem>>, vector<8x128xf32>,
    %c0_81 = arith.constant 0 : index
    %c0_82 = arith.constant 0 : index
    %263 = vector.load %arg11[%c0_81, %c0_82] : memref<8x128xf32, #tpu.memory_space<vmem>>, vector<8x128xf32>
    tpu.vector_store %arg11[%c0_81, %c0_82], %259 {strides = array<i32>} : memref<8x128xf32, #tpu.memory_space<vmem>>, vector<8x128xf32>,
    %c0_i32_83 = arith.constant 0 : i32
    %264 = arith.cmpi eq, %arg0, %c0_i32_83 : i32
    %265 = arith.extui %264 : i1 to i32
    %c0_i32_84 = arith.constant 0 : i32
    %266 = arith.cmpi ne, %265, %c0_i32_84 : i32
    scf.if %266 {
      %c0_85 = arith.constant 0 : index
      %c0_86 = arith.constant 0 : index
      %267 = vector.load %arg10[%c0_85, %c0_86] : memref<8x128xf32, #tpu.memory_space<vmem>>, vector<8x128xf32>
      %268 = vector.shape_cast %267 : vector<8x128xf32> to vector<2x4x128xf32>
      %cst_87 = arith.constant dense<0xFF800000> : vector<2x128xf32>
      %269 = vector.multi_reduction <maximumf>, %268, %cst_87 [1] : vector<2x4x128xf32> to vector<2x128xf32>
      %c0_88 = arith.constant 0 : index
      %c0_89 = arith.constant 0 : index
      %270 = vector.load %arg5[%c0_88, %c0_89] : memref<128x512xf32, #tpu.memory_space<vmem>>, vector<128x512xf32>
      %cst_90 = arith.constant dense<0.000000e+00> : vector<2x512xf32>
      %271 = tpu.matmul %269, %270, %cst_90 {dimension_numbers = #tpu.dot_dimension_numbers<[1], [0], [0], [1], [0, 0, 1, 1], [], []>} : vector<2x128xf32>, vector<128x512xf32>, vector<2x512xf32> -> vector<2x512xf32>
      %c0_91 = arith.constant 0 : index
      %c0_92 = arith.constant 0 : index
      %272 = vector.load %arg6[%c0_91, %c0_92] : memref<1x512xf32, #tpu.memory_space<vmem>>, vector<1x512xf32>
      %273 = vector.broadcast %272 : vector<1x512xf32> to vector<2x512xf32>
      %274 = arith.addf %271, %273 : vector<2x512xf32>
      %cst_93 = arith.constant 0.000000e+00 : f32
      %275 = vector.broadcast %cst_93 : f32 to vector<2x512xf32>
      %276 = arith.maximumf %274, %275 : vector<2x512xf32>
      %c0_94 = arith.constant 0 : index
      %c0_95 = arith.constant 0 : index
      %277 = vector.load %arg7[%c0_94, %c0_95] : memref<512x128xf32, #tpu.memory_space<vmem>>, vector<512x128xf32>
      %cst_96 = arith.constant dense<0.000000e+00> : vector<2x128xf32>
      %278 = tpu.matmul %276, %277, %cst_96 {dimension_numbers = #tpu.dot_dimension_numbers<[1], [0], [0], [1], [0, 0, 1, 1], [], []>} : vector<2x512xf32>, vector<512x128xf32>, vector<2x128xf32> -> vector<2x128xf32>
      %c0_97 = arith.constant 0 : index
      %c0_98 = arith.constant 0 : index
      %279 = vector.load %arg8[%c0_97, %c0_98] : memref<1x128xf32, #tpu.memory_space<vmem>>, vector<1x128xf32>
      %280 = vector.broadcast %279 : vector<1x128xf32> to vector<2x128xf32>
      %281 = arith.addf %278, %280 : vector<2x128xf32>
      %c0_99 = arith.constant 0 : index
      %c0_100 = arith.constant 0 : index
      %282 = vector.load %arg9[%c0_99, %c0_100] : memref<2x128xf32, #tpu.memory_space<vmem>>, vector<2x128xf32>
      tpu.vector_store %arg9[%c0_99, %c0_100], %281 {strides = array<i32>} : memref<2x128xf32, #tpu.memory_space<vmem>>, vector<2x128xf32>,
    } else {
    }
    return
  }
  func.func @transform_0(%arg0: i32) -> (i32, i32, i32) {
    %c0_i32 = arith.constant 0 : i32
    %c0_i32_0 = arith.constant 0 : i32
    %c0_i32_1 = arith.constant 0 : i32
    return %arg0, %c0_i32, %c0_i32_0 : i32, i32, i32
  }
  func.func @transform_1(%arg0: i32) -> (i32, i32) {
    %c0_i32 = arith.constant 0 : i32
    %c0_i32_0 = arith.constant 0 : i32
    %c0_i32_1 = arith.constant 0 : i32
    return %c0_i32, %c0_i32_0 : i32, i32
  }
  func.func @transform_2(%arg0: i32) -> (i32, i32) {
    %c0_i32 = arith.constant 0 : i32
    %c0_i32_0 = arith.constant 0 : i32
    %c0_i32_1 = arith.constant 0 : i32
    return %c0_i32, %c0_i32_0 : i32, i32
  }
  func.func @transform_3(%arg0: i32) -> (i32, i32) {
    %c0_i32 = arith.constant 0 : i32
    %c0_i32_0 = arith.constant 0 : i32
    %c0_i32_1 = arith.constant 0 : i32
    return %c0_i32, %c0_i32_0 : i32, i32
  }
  func.func @transform_4(%arg0: i32) -> (i32, i32) {
    %c0_i32 = arith.constant 0 : i32
    %c0_i32_0 = arith.constant 0 : i32
    %c0_i32_1 = arith.constant 0 : i32
    return %c0_i32, %c0_i32_0 : i32, i32
  }
  func.func @transform_5(%arg0: i32) -> (i32, i32) {
    %c0_i32 = arith.constant 0 : i32
    %c0_i32_0 = arith.constant 0 : i32
    %c0_i32_1 = arith.constant 0 : i32
    return %c0_i32, %c0_i32_0 : i32, i32
  }
  func.func @transform_6(%arg0: i32) -> (i32, i32) {
    %c0_i32 = arith.constant 0 : i32
    %c0_i32_0 = arith.constant 0 : i32
    %c0_i32_1 = arith.constant 0 : i32
    return %c0_i32, %c0_i32_0 : i32, i32
  }
  func.func @transform_7(%arg0: i32) -> (i32, i32) {
    %c0_i32 = arith.constant 0 : i32
    %c0_i32_0 = arith.constant 0 : i32
    %c0_i32_1 = arith.constant 0 : i32
    return %c0_i32, %c0_i32_0 : i32, i32
  }
  func.func @transform_8(%arg0: i32) -> (i32, i32) {
    %c0_i32 = arith.constant 0 : i32
    %c0_i32_0 = arith.constant 0 : i32
    %c0_i32_1 = arith.constant 0 : i32
    return %c0_i32, %c0_i32_0 : i32, i32
  }
}

</mosaic_0001>

<bundles_post_ra>
// kernel: tpu_custom_call.1
= control target key start
LH: loop header
LB: loop body
LE: loop exit
PB: predicated region body
PF: predicated region fallthrough
CT: control target
= control target key end

     0   :  { %13 = vsyncpa [#allocation6], 0  ;;  %s4096_s0 = inlined_call_operand.hbm [shape: f32[8,8,16], index: 0, kind: input, shape index: {}]   ;;  %s4097_s1 = inlined_call_operand.hbm [shape: f32[16,512], index: 1, kind: input, shape index: {}]   ;;  %s4098_s2 = inlined_call_operand.vmem [shape: f32[1,512], index: 2, kind: input, shape index: {}]   ;;  %s4099_s3 = inlined_call_operand.hbm [shape: f32[128,512], index: 3, kind: input, shape index: {}]   ;;  %s4100_s4 = inlined_call_operand.hbm [shape: f32[128,512], index: 4, kind: input, shape index: {}]   ;;  %s4101_s5 = inlined_call_operand.vmem [shape: f32[1,512], index: 5, kind: input, shape index: {}]   ;;  %s4102_s6 = inlined_call_operand.hbm [shape: f32[512,128], index: 6, kind: input, shape index: {}]   ;;  %s4103_s7 = inlined_call_operand.vmem [shape: f32[1,128], index: 7, kind: input, shape index: {}]   ;;  %s4104_s8 = inlined_call_operand.hbm [shape: f32[2,128], index: 8, kind: output, shape index: {}]  }
   0x1   :  { %14 = vsyncpa [#allocation9], 0 }
   0x2   :  { %15 = vsyncpa [#allocation12], 0 }
   0x3   :  { %16 = vsyncpa [#allocation7], 0  ;;  %s3482_s27 = smov [#allocation8]   ;;  %s3342_s9 = scalar_lea.hbm %s4097_s1, 1024 }
   0x4   :  { %s34_s28 = sshll.u32 %s3482_s27, 4  ;;  %p3343_p0 = scmp.ne.s32.totalorder %s4097_s1, %s3342_s9  ;;  %s35_s28 = int_to_ptr.vmem [resolvable:$true] %s34_s28 }
   0x5   :  { %p3346_p1 = scmp.lt.u32.totalorder %s3342_s9, %s4097_s1 }
   0x7   :  { %p3348_p2 = pnand %p3346_p1, %p3343_p0 }
   0x9   :  { %3351 = shalt.err (!%p3348_p2)
}
   0xa   :  { %s3352_s14 = scalar_lea.vmem %s35_s28, 1024  ;;  %p3357_p4 = scmp.lt.s32.totalorder %s35_s28, %s35_s28 }
   0xb   :  { %p3353_p3 = scmp.ne.s32.totalorder %s35_s28, %s3352_s14  ;;  %p3358_p5 = scmp.lt.s32.totalorder %s3352_s14, %s3352_s14 }
   0xd   :  { %p3359_p6 = por %p3358_p5, %p3357_p4 }
   0xf   :  { %p3360_p7 = pnand %p3359_p6, %p3353_p3 }
  0x11   :  { %3363 = shalt.err (!%p3360_p7)
}
  0x12   :  { %s3483_s15 = smov 512   ;;  %s3484_s16 = smov 32  }
  0x13   :  { %40 = dma.hbm_to_vmem [thread:$0]  %s4097_s1, 1024, %s35_s28, [#allocation9], %s3483_s15, %s3483_s15, %s3484_s16  }
  0x14   :  { %s3485_s19 = smov [#allocation11]   ;;  %s3486_s21 = smov [#allocation5]  }
  0x15   :  { %s60_s20 = sshll.u32 %s3485_s19, 4  ;;  %s22_s22 = sshll.u32 %s3486_s21, 4  ;;  %s61_s20 = int_to_ptr.vmem [resolvable:$true] %s60_s20  ;;  %s23_s22 = int_to_ptr.vmem [resolvable:$true] %s22_s22 }
  0x16   :  { %s3364_s25 = scalar_lea.hbm %s4100_s4, 8192 }
  0x17   :  { %p3365_p8 = scmp.ne.s32.totalorder %s4100_s4, %s3364_s25  ;;  %p3368_p9 = scmp.lt.u32.totalorder %s3364_s25, %s4100_s4 }
  0x19   :  { %p3370_p10 = pnand %p3368_p9, %p3365_p8 }
  0x1b   :  { %3373 = shalt.err (!%p3370_p10)
}
  0x1c   :  { %s3374_s1 = scalar_lea.vmem %s61_s20, 8192  ;;  %p3379_p12 = scmp.lt.s32.totalorder %s61_s20, %s61_s20 }
  0x1d   :  { %p3375_p11 = scmp.ne.s32.totalorder %s61_s20, %s3374_s1  ;;  %p3380_p13 = scmp.lt.s32.totalorder %s3374_s1, %s3374_s1 }
  0x1f   :  { %p3381_p0 = por %p3380_p13, %p3379_p12 }
  0x21   :  { %p3382_p1 = pnand %p3381_p0, %p3375_p11 }
  0x23   :  { %3385 = shalt.err (!%p3382_p1)
}
  0x24   :  { %66 = dma.hbm_to_vmem [thread:$0]  %s4100_s4, 8192, %s61_s20, [#allocation12], %s3483_s15, %s3483_s15, %s3484_s16  }
  0x25   :  { %s3386_s12 = scalar_lea.hbm %s4096_s0, 1024 }
  0x26   :  { %p3387_p2 = scmp.ne.s32.totalorder %s4096_s0, %s3386_s12  ;;  %p3390_p3 = scmp.lt.u32.totalorder %s3386_s12, %s4096_s0 }
  0x28   :  { %p3392_p4 = pnand %p3390_p3, %p3387_p2 }
  0x2a   :  { %3395 = shalt.err (!%p3392_p4)
}
  0x2b   :  { %s3396_s19 = scalar_lea.vmem %s23_s22, 1024  ;;  %p3401_p6 = scmp.lt.s32.totalorder %s23_s22, %s23_s22 }
  0x2c   :  { %p3397_p5 = scmp.ne.s32.totalorder %s23_s22, %s3396_s19  ;;  %p3402_p7 = scmp.lt.s32.totalorder %s3396_s19, %s3396_s19 }
  0x2e   :  { %p3403_p8 = por %p3402_p7, %p3401_p6 }
  0x30   :  { %p3404_p9 = pnand %p3403_p8, %p3397_p5 }
  0x32   :  { %3407 = shalt.err (!%p3404_p9)
}
  0x33   :  { %s3487_s4 = smov 128   ;;  %s3488_s20 = smov 8  }
  0x34   :  { %28 = dma.hbm_to_vmem [thread:$0]  %s4096_s0, 1024, %s23_s22, [#allocation6], %s3487_s4, %s3487_s4, %s3488_s20  }
  0x35   :  { %s3489_s24 = smov [#allocation10]   ;;  %s3490_s26 = smov [#allocation13]  }
  0x36   :  { %s48_s25 = sshll.u32 %s3489_s24, 4  ;;  %s74_s27 = sshll.u32 %s3490_s26, 4  ;;  %s49_s25 = int_to_ptr.vmem [resolvable:$true] %s48_s25  ;;  %s75_s27 = int_to_ptr.vmem [resolvable:$true] %s74_s27 }
  0x37   :  { %s3408_s1 = scalar_lea.hbm %s4099_s3, 8192 }
  0x38   :  { %p3409_p10 = scmp.ne.s32.totalorder %s4099_s3, %s3408_s1  ;;  %p3412_p11 = scmp.lt.u32.totalorder %s3408_s1, %s4099_s3 }
  0x3a   :  { %p3414_p12 = pnand %p3412_p11, %p3409_p10 }
  0x3c   :  { %3417 = shalt.err (!%p3414_p12)
}
  0x3d   :  { %s3418_s0 = scalar_lea.vmem %s49_s25, 8192  ;;  %p3423_p0 = scmp.lt.s32.totalorder %s49_s25, %s49_s25 }
  0x3e   :  { %p3419_p13 = scmp.ne.s32.totalorder %s49_s25, %s3418_s0  ;;  %p3424_p1 = scmp.lt.s32.totalorder %s3418_s0, %s3418_s0 }
  0x40   :  { %p3425_p2 = por %p3424_p1, %p3423_p0 }
  0x42   :  { %p3426_p3 = pnand %p3425_p2, %p3419_p13 }
  0x44   :  { %3429 = shalt.err (!%p3426_p3)
}
  0x45   :  { %54 = dma.hbm_to_vmem [thread:$0]  %s4099_s3, 8192, %s49_s25, [#allocation9], %s3483_s15, %s3483_s15, %s3484_s16  }
  0x46   :  { %s3430_s17 = scalar_lea.hbm %s4102_s6, 8192 }
  0x47   :  { %p3431_p4 = scmp.ne.s32.totalorder %s4102_s6, %s3430_s17  ;;  %p3434_p5 = scmp.lt.u32.totalorder %s3430_s17, %s4102_s6 }
  0x49   :  { %p3436_p6 = pnand %p3434_p5, %p3431_p4 }
  0x4b   :  { %3439 = shalt.err (!%p3436_p6)
}
  0x4c   :  { %s3440_s24 = scalar_lea.vmem %s75_s27, 8192  ;;  %p3445_p8 = scmp.lt.s32.totalorder %s75_s27, %s75_s27 }
  0x4d   :  { %p3441_p7 = scmp.ne.s32.totalorder %s75_s27, %s3440_s24  ;;  %p3446_p9 = scmp.lt.s32.totalorder %s3440_s24, %s3440_s24 }
  0x4f   :  { %p3447_p10 = por %p3446_p9, %p3445_p8 }
  0x51   :  { %p3448_p11 = pnand %p3447_p10, %p3441_p7 }
  0x53   :  { %3451 = shalt.err (!%p3448_p11)
}
  0x54   :  { %80 = dma.hbm_to_vmem [thread:$0]  %s4102_s6, 8192, %s75_s27, [#allocation12], %s3487_s4, %s3487_s4, %s3488_s20  }
  0x55   :  { %3474 = dma.done.wait [#allocation6], 1024  }
  0x56   :  { %3475 = vsyncadd [#allocation6], 4294966272 }
  0x57   :  { %3476 = dma.done.wait [#allocation9], 9216  }
  0x58   :  { %3477 = vsyncadd [#allocation9], 4294958080 }
  0x59   :  { %3478 = dma.done.wait [#allocation12], 16384  }
  0x5a   :  { %3479 = vsyncadd [#allocation12], 4294950912  ;;  %v3491_v0 = vmov 0.0   ;;  %v113_v1 = vld [vmem:[#allocation8 + $0x8] sm:$0xff]  ;;  %v115_v3 = vld [vmem:[#allocation8 + $0x18] sm:$0xff]  ;;  %vm142_vm0 = vcmask 130048  }
  0x5b   :  { %231 = vmatprep.mubr.f32.mxu0 %v3491_v0  ;;  %344 = vmatprep.mubr.f32.mxu1 %v3491_v0  ;;  %v117_v2 = vld [vmem:[#allocation8 + $0x28] sm:$0xff]  ;;  %v119_v5 = vld [vmem:[#allocation8 + $0x38] sm:$0xff]  ;;  %v112_v6 = vld [vmem:[#allocation8] sm:$0xff]  ;;  %vm1899_vm1 = vcmask 1043456   ;;  %vm2002_vm2 = vcmask 1041409   ;;  %s3492_s25 = smov [#allocation14]  }
  0x5c   :  { %v2491_v4 = vpack.c.bf16 %v117_v2, %v113_v1  ;;  %v116_v7 = vld [vmem:[#allocation8 + $0x20] sm:$0xff]  ;;  %v2495_v8 = vpack.c.bf16 %v119_v5, %v115_v3  ;;  %v114_v10 = vld [vmem:[#allocation8 + $0x10] sm:$0xff]  ;;  %v432_v14 = vld [vmem:[#allocation10 + $0x8] sm:$0xff]  ;;  %s2369_s26 = sshll.u32 %s3492_s25, 4  ;;  %s2370_s26 = int_to_ptr.vmem [resolvable:$true] %s2369_s26 }
  0x5d   :  { %v2493_v9 = vpack.c.bf16 %v116_v7, %v112_v6  ;;  %v118_v11 = vld [vmem:[#allocation8 + $0x30] sm:$0xff]  ;;  %v104_v12 = vld [vmem:[#allocation5] sm:$0xff]  ;;  %v436_v15 = vld [vmem:[#allocation10 + $0x28] sm:$0xff]  ;;  %s3452_s27 = scalar_lea.vmem %s2370_s26, 32  ;;  %p3457_p13 = scmp.lt.s32.totalorder %s2370_s26, %s2370_s26 }
  0x5e   :  { %2492 = vmatprep.subr.bf16.mxu0 %v2491_v4  ;;  %v2497_v13 = vpack.c.bf16 %v118_v11, %v114_v10  ;;  %v434_v16 = vld [vmem:[#allocation10 + $0x18] sm:$0xff]  ;;  %2496 = vmatprep.subr.bf16.mxu1 %v2495_v8  ;;  %v3615_v17 = vpack.c.bf16 %v436_v15, %v432_v14  ;;  %v431_v19 = vld [vmem:[#allocation10] sm:$0xff]  ;;  %v433_v23 = vld [vmem:[#allocation10 + $0x10] sm:$0xff]  ;;  %p3453_p12 = scmp.ne.s32.totalorder %s2370_s26, %s3452_s27  ;;  %p3458_p0 = scmp.lt.s32.totalorder %s3452_s27, %s3452_s27 }
  0x5f   :  { %2494 = vmatpush1.bf16.msra.mxu0 %v2493_v9  ;;  %v438_v18 = vld [vmem:[#allocation10 + $0x38] sm:$0xff]  ;;  %v435_v20 = vld [vmem:[#allocation10 + $0x20] sm:$0xff]  ;;  %v437_v24 = vld [vmem:[#allocation10 + $0x30] sm:$0xff] }
  0x60   :  { %2498 = vmatpush1.bf16.msra.mxu1 %v2497_v13  ;;  %v3617_v21 = vpack.c.bf16 %v438_v18, %v434_v16  ;;  %v3619_v22 = vpack.c.bf16 %v435_v20, %v431_v19  ;;  %2500 = vmatprep.subr.bf16.mxu0 %v3615_v17  ;;  %v3622_v25 = vpack.c.bf16 %v437_v24, %v433_v23  ;;  %v440_v26 = vld [vmem:[#allocation10 + $0x48] sm:$0xff]  ;;  %v442_v28 = vld [vmem:[#allocation10 + $0x58] sm:$0xff]  ;;  %v439_v31 = vld [vmem:[#allocation10 + $0x40] sm:$0xff]  ;;  %p3459_p1 = por %p3458_p0, %p3457_p13 }
  0x61   :  { %v444_v27 = vld [vmem:[#allocation10 + $0x68] sm:$0xff]  ;;  %v446_v30 = vld [vmem:[#allocation10 + $0x78] sm:$0xff]  ;;  %v443_v32 = vld [vmem:[#allocation10 + $0x60] sm:$0xff] }
  0x62   :  { %2380 = vmatmul.mubr.msk.f32.vlgmr.msra.gmra.mrb[0].mxu0 %vm142_vm0, %v104_v12  ;;  %2532 = vmatprep.subr.bf16.mxu1 %v3617_v21  ;;  %v3626_v29 = vpack.c.bf16 %v444_v27, %v440_v26  ;;  %v105_v33 = vld [vmem:[#allocation5 + $0x8] sm:$0xff]  ;;  %v3630_v34 = vpack.c.bf16 %v446_v30, %v442_v28  ;;  %v3632_v35 = vpack.c.bf16 %v443_v32, %v439_v31  ;;  %v441_v36 = vld [vmem:[#allocation10 + $0x50] sm:$0xff]  ;;  %v450_v41 = vld [vmem:[#allocation10 + $0x98] sm:$0xff]  ;;  %p3460_p2 = pnand %p3459_p1, %p3453_p12 }
  0x63   :  { %2388 = vmatmul.mubr.msk.f32.vlgmr.msra.gmra.mrb[0].mxu1 %vm142_vm0, %v104_v12  ;;  %2502 = vmatpush1.bf16.msra.mxu0 %v3619_v22  ;;  %v445_v37 = vld [vmem:[#allocation10 + $0x70] sm:$0xff]  ;;  %v448_v39 = vld [vmem:[#allocation10 + $0x88] sm:$0xff]  ;;  %v454_v43 = vld [vmem:[#allocation10 + $0xb8] sm:$0xff] }
  0x64   :  { %2534 = vmatpush1.bf16.msra.mxu1 %v3622_v25  ;;  %237 = vmatprep.mubr.f32.mxu0 %v3491_v0  ;;  %v3636_v38 = vpack.c.bf16 %v445_v37, %v441_v36  ;;  %v452_v40 = vld [vmem:[#allocation10 + $0xa8] sm:$0xff]  ;;  %v447_v44 = vld [vmem:[#allocation10 + $0x80] sm:$0xff]  ;;  %v106_v46 = vld [vmem:[#allocation5 + $0x10] sm:$0xff]  ;;  %v3644_v47 = vpack.c.bf16 %v454_v43, %v450_v41 }
  0x65   :  { %350 = vmatprep.mubr.f32.mxu1 %v3491_v0  ;;  %2504 = vmatprep.subr.bf16.mxu0 %v3626_v29  ;;  %v3640_v42 = vpack.c.bf16 %v452_v40, %v448_v39  ;;  %v451_v45 = vld [vmem:[#allocation10 + $0xa0] sm:$0xff]  ;;  %v449_v48 = vld [vmem:[#allocation10 + $0x90] sm:$0xff]  ;;  %v456_v51 = vld [vmem:[#allocation10 + $0xc8] sm:$0xff] }
  0x66   :  { %2381 = vmatmul.mubr.msk.f32.gmra.mrb[2].mxu0 %vm142_vm0, %v105_v33  ;;  %2536 = vmatprep.subr.bf16.mxu1 %v3630_v34  ;;  %v453_v49 = vld [vmem:[#allocation10 + $0xb0] sm:$0xff]  ;;  %v3648_v50 = vpack.c.bf16 %v451_v45, %v447_v44  ;;  %v460_v52 = vld [vmem:[#allocation10 + $0xe8] sm:$0xff]  ;;  %v458_v53 = vld [vmem:[#allocation10 + $0xd8] sm:$0xff] }
  0x67   :  { %2389 = vmatmul.mubr.msk.f32.gmra.mrb[2].mxu1 %vm142_vm0, %v105_v33  ;;  %2506 = vmatpush1.bf16.msra.mxu0 %v3632_v35  ;;  %v3652_v54 = vpack.c.bf16 %v453_v49, %v449_v48  ;;  %v462_v55 = vld [vmem:[#allocation10 + $0xf8] sm:$0xff]  ;;  %v455_v56 = vld [vmem:[#allocation10 + $0xc0] sm:$0xff]  ;;  %v3656_v58 = vpack.c.bf16 %v460_v52, %v456_v51  ;;  %v457_v59 = vld [vmem:[#allocation10 + $0xd0] sm:$0xff] }
  0x68   :  { %2538 = vmatpush1.bf16.msra.mxu1 %v3636_v38  ;;  %243 = vmatprep.mubr.f32.mxu0 %v3491_v0  ;;  %v459_v57 = vld [vmem:[#allocation10 + $0xe0] sm:$0xff]  ;;  %v461_v60 = vld [vmem:[#allocation10 + $0xf0] sm:$0xff]  ;;  %v3660_v61 = vpack.c.bf16 %v462_v55, %v458_v53  ;;  %v464_v62 = vld [vmem:[#allocation10 + $0x108] sm:$0xff] }
  0x69   :  { %356 = vmatprep.mubr.f32.mxu1 %v3491_v0  ;;  %2508 = vmatprep.subr.bf16.mxu0 %v3640_v42  ;;  %v468_v63 = vld [vmem:[#allocation10 + $0x128] sm:$0xff]  ;;  %v107_v1 = vld [vmem:[#allocation5 + $0x18] sm:$0xff]  ;;  %v3664_v2 = vpack.c.bf16 %v459_v57, %v455_v56  ;;  %v3668_v5 = vpack.c.bf16 %v461_v60, %v457_v59  ;;  %v463_v6 = vld [vmem:[#allocation10 + $0x100] sm:$0xff] }
  0x6a   :  { %2382 = vmatmul.mubr.msk.f32.gmra.mrb[4].mxu0 %vm142_vm0, %v106_v46  ;;  %2540 = vmatprep.subr.bf16.mxu1 %v3644_v47  ;;  %v466_v3 = vld [vmem:[#allocation10 + $0x118] sm:$0xff]  ;;  %v467_v7 = vld [vmem:[#allocation10 + $0x120] sm:$0xff]  ;;  %v3672_v8 = vpack.c.bf16 %v468_v63, %v464_v62  ;;  %v465_v9 = vld [vmem:[#allocation10 + $0x110] sm:$0xff] }
  0x6b   :  { %2390 = vmatmul.mubr.msk.f32.gmra.mrb[4].mxu1 %vm142_vm0, %v106_v46  ;;  %2510 = vmatpush1.bf16.msra.mxu0 %v3648_v50  ;;  %v470_v4 = vld [vmem:[#allocation10 + $0x138] sm:$0xff]  ;;  %v469_v10 = vld [vmem:[#allocation10 + $0x130] sm:$0xff]  ;;  %v472_v12 = vld [vmem:[#allocation10 + $0x148] sm:$0xff]  ;;  %v3680_v15 = vpack.c.bf16 %v467_v7, %v463_v6  ;;  %v122_v7 = vlaneseq }
  0x6c   :  { %2542 = vmatpush1.bf16.msra.mxu1 %v3652_v54  ;;  %249 = vmatprep.mubr.f32.mxu0 %v3491_v0  ;;  %v3676_v11 = vpack.c.bf16 %v470_v4, %v466_v3  ;;  %v476_v13 = vld [vmem:[#allocation10 + $0x168] sm:$0xff]  ;;  %v108_v14 = vld [vmem:[#allocation5 + $0x20] sm:$0xff]  ;;  %v474_v16 = vld [vmem:[#allocation10 + $0x158] sm:$0xff]  ;;  %v3684_v19 = vpack.c.bf16 %v469_v10, %v465_v9 }
  0x6d   :  { %362 = vmatprep.mubr.f32.mxu1 %v3491_v0  ;;  %2512 = vmatprep.subr.bf16.mxu0 %v3656_v58  ;;  %v478_v18 = vld [vmem:[#allocation10 + $0x178] sm:$0xff]  ;;  %v471_v20 = vld [vmem:[#allocation10 + $0x140] sm:$0xff]  ;;  %v3688_v24 = vpack.c.bf16 %v476_v13, %v472_v12  ;;  %v473_v26 = vld [vmem:[#allocation10 + $0x150] sm:$0xff]  ;;  %v3781_v9 = vshrl.u32 %v122_v7, 7 }
  0x6e   :  { %2383 = vmatmul.mubr.msk.f32.gmra.mrb[6].mxu0 %vm142_vm0, %v107_v1  ;;  %2544 = vmatprep.subr.bf16.mxu1 %v3660_v61  ;;  %v475_v23 = vld [vmem:[#allocation10 + $0x160] sm:$0xff]  ;;  %v477_v27 = vld [vmem:[#allocation10 + $0x170] sm:$0xff]  ;;  %v3692_v28 = vpack.c.bf16 %v478_v18, %v474_v16  ;;  %v480_v30 = vld [vmem:[#allocation10 + $0x188] sm:$0xff] }
  0x6f   :  { %2391 = vmatmul.mubr.msk.f32.gmra.mrb[6].mxu1 %vm142_vm0, %v107_v1  ;;  %2514 = vmatpush1.bf16.msra.mxu0 %v3664_v2  ;;  %v484_v31 = vld [vmem:[#allocation10 + $0x1a8] sm:$0xff]  ;;  %v3696_v33 = vpack.c.bf16 %v475_v23, %v471_v20  ;;  %v482_v36 = vld [vmem:[#allocation10 + $0x198] sm:$0xff]  ;;  %v3700_v39 = vpack.c.bf16 %v477_v27, %v473_v26  ;;  %v479_v40 = vld [vmem:[#allocation10 + $0x180] sm:$0xff]  ;;  %v124_v10 = vsub.s32 0, %v3781_v9  ;;  %v128_v13 = vsub.s32 1, %v3781_v9 }
  0x70   :  { %2546 = vmatpush1.bf16.msra.mxu1 %v3668_v5  ;;  %255 = vmatprep.mubr.f32.mxu0 %v3491_v0  ;;  %v109_v32 = vld [vmem:[#allocation5 + $0x28] sm:$0xff]  ;;  %v486_v37 = vld [vmem:[#allocation10 + $0x1b8] sm:$0xff]  ;;  %v483_v41 = vld [vmem:[#allocation10 + $0x1a0] sm:$0xff]  ;;  %v3704_v43 = vpack.c.bf16 %v484_v31, %v480_v30  ;;  %v136_v20 = vsub.s32 3, %v3781_v9 }
  0x71   :  { %368 = vmatprep.mubr.f32.mxu1 %v3491_v0  ;;  %2516 = vmatprep.subr.bf16.mxu0 %v3672_v8  ;;  %v481_v44 = vld [vmem:[#allocation10 + $0x190] sm:$0xff]  ;;  %v3708_v46 = vpack.c.bf16 %v486_v37, %v482_v36  ;;  %v488_v48 = vld [vmem:[#allocation10 + $0x1c8] sm:$0xff]  ;;  %v3712_v52 = vpack.c.bf16 %v483_v41, %v479_v40  ;;  %v490_v53 = vld [vmem:[#allocation10 + $0x1d8] sm:$0xff]  ;;  %v132_v40 = vsub.s32 2, %v3781_v9 }
  0x72   :  { %2384 = vmatmul.mubr.msk.f32.gmra.mrb[8].mxu0 %vm142_vm0, %v108_v14  ;;  %2548 = vmatprep.subr.bf16.mxu1 %v3676_v11  ;;  %v485_v45 = vld [vmem:[#allocation10 + $0x1b0] sm:$0xff]  ;;  %v492_v49 = vld [vmem:[#allocation10 + $0x1e8] sm:$0xff]  ;;  %v494_v55 = vld [vmem:[#allocation10 + $0x1f8] sm:$0xff] }
  0x73   :  { %2392 = vmatmul.mubr.msk.f32.gmra.mrb[8].mxu1 %vm142_vm0, %v108_v14  ;;  %2518 = vmatpush1.bf16.msra.mxu0 %v3680_v15  ;;  %v110_v51 = vld [vmem:[#allocation5 + $0x30] sm:$0xff]  ;;  %v3716_v56 = vpack.c.bf16 %v485_v45, %v481_v44  ;;  %v487_v57 = vld [vmem:[#allocation10 + $0x1c0] sm:$0xff]  ;;  %v3720_v60 = vpack.c.bf16 %v492_v49, %v488_v48  ;;  %v3724_v1 = vpack.c.bf16 %v494_v55, %v490_v53  ;;  %v111_v3 = vld [vmem:[#allocation5 + $0x38] sm:$0xff] }
  0x74   :  { %2550 = vmatpush1.bf16.msra.mxu1 %v3684_v19  ;;  %261 = vmatprep.mubr.f32.mxu0 %v3491_v0  ;;  %v491_v59 = vld [vmem:[#allocation10 + $0x1e0] sm:$0xff]  ;;  %v489_v62 = vld [vmem:[#allocation10 + $0x1d0] sm:$0xff] }
  0x75   :  { %374 = vmatprep.mubr.f32.mxu1 %v3491_v0  ;;  %2520 = vmatprep.subr.bf16.mxu0 %v3688_v24  ;;  %v493_v63 = vld [vmem:[#allocation10 + $0x1f0] sm:$0xff]  ;;  %v3728_v4 = vpack.c.bf16 %v491_v59, %v487_v57  ;;  %v120_v12 = vld [vmem:[%s4098_s2] sm:$0xf] }
  0x76   :  { %2385 = vmatmul.mubr.msk.f32.gmra.mrb[10].mxu0 %vm142_vm0, %v109_v32  ;;  %2552 = vmatprep.subr.bf16.mxu1 %v3692_v28  ;;  %v3732_v6 = vpack.c.bf16 %v493_v63, %v489_v62  ;;  %v3790_v14 = vrot.slane %v120_v12, %v124_v10  ;;  %v3794_v16 = vrot.slane %v120_v12, %v128_v13  ;;  %v2420_v9 = vld [vmem:[%s4103_s7] ss:$0 sm:$0xff] }
  0x77   :  { %2393 = vmatmul.mubr.msk.f32.gmra.mrb[10].mxu1 %vm142_vm0, %v109_v32  ;;  %2522 = vmatpush1.bf16.msra.mxu0 %v3696_v33  ;;  %v3801_v37 = vrot.slane %v120_v12, %v136_v20  ;;  %v3807_v44 = vrot.slane %v120_v12, %v132_v40 }
  0x78   :  { %2554 = vmatpush1.bf16.msra.mxu1 %v3700_v39  ;;  %267 = vmatprep.mubr.f32.mxu0 %v3491_v0 }
  0x79   :  { %380 = vmatprep.mubr.f32.mxu1 %v3491_v0  ;;  %2524 = vmatprep.subr.bf16.mxu0 %v3704_v43 }
  0x7a   :  { %2386 = vmatmul.mubr.msk.f32.gmra.mrb[12].mxu0 %vm142_vm0, %v110_v51  ;;  %2556 = vmatprep.subr.bf16.mxu1 %v3708_v46 }
  0x7b   :  { %2394 = vmatmul.mubr.msk.f32.gmra.mrb[12].mxu1 %vm142_vm0, %v110_v51  ;;  %2526 = vmatpush1.bf16.msra.mxu0 %v3712_v52 }
  0x7c   :  { %2558 = vmatpush1.bf16.msra.mxu1 %v3716_v56  ;;  %273 = vmatprep.mubr.f32.mxu0 %v3491_v0 }
  0x7d   :  { %386 = vmatprep.mubr.f32.mxu1 %v3491_v0  ;;  %2528 = vmatprep.subr.bf16.mxu0 %v3720_v60 }
  0x7e   :  { %2387 = vmatmul.mubr.msk.f32.gmra.mrb[14].mxu0 %vm142_vm0, %v111_v3  ;;  %2560 = vmatprep.subr.bf16.mxu1 %v3724_v1 }
  0x7f   :  { %2395 = vmatmul.mubr.msk.f32.gmra.mrb[14].mxu1 %vm142_vm0, %v111_v3  ;;  %2530 = vmatpush1.bf16.msra.mxu0 %v3728_v4 }
  0x80   :  { %2562 = vmatpush1.bf16.msra.mxu1 %v3732_v6  ;;  %559 = vmatprep.mubr.f32.mxu0 %v3491_v0 }
  0x81   :  { %630 = vmatprep.mubr.f32.mxu1 %v3491_v0  ;;  %2564 = vmatprep.subr.bf16.mxu0 %v3615_v17 }
  0x82   :  { %560 = vmatmul.mubr.f32.vlgmr.msra.gmra.mrb[0].mxu0 %v3491_v0  ;;  %2596 = vmatprep.subr.bf16.mxu1 %v3617_v21 }
  0x83   :  { %631 = vmatmul.mubr.f32.vlgmr.msra.gmra.mrb[0].mxu1 %v3491_v0  ;;  %2566 = vmatpush1.bf16.msra.mxu0 %v3619_v22 }
  0x84   :  { %2598 = vmatpush1.bf16.msra.mxu1 %v3622_v25  ;;  %2568 = vmatprep.subr.bf16.mxu0 %v3626_v29 }
  0x85   :  { %2600 = vmatprep.subr.bf16.mxu1 %v3630_v34  ;;  %734 = vmatprep.mubr.f32.mxu0 %v3491_v0 }
  0x86   :  { %805 = vmatprep.mubr.f32.mxu1 %v3491_v0 }
  0x87   :  { %2570 = vmatpush1.bf16.msra.mxu0 %v3632_v35 }
  0x88   :  { %2602 = vmatpush1.bf16.msra.mxu1 %v3636_v38  ;;  %2572 = vmatprep.subr.bf16.mxu0 %v3640_v42 }
  0x89   :  { %2604 = vmatprep.subr.bf16.mxu1 %v3644_v47 }
  0x8b   :  { %2574 = vmatpush1.bf16.msra.mxu0 %v3648_v50 }
  0x8c   :  { %2606 = vmatpush1.bf16.msra.mxu1 %v3652_v54  ;;  %2576 = vmatprep.subr.bf16.mxu0 %v3656_v58 }
  0x8d   :  { %2608 = vmatprep.subr.bf16.mxu1 %v3660_v61 }
  0x8f   :  { %2578 = vmatpush1.bf16.msra.mxu0 %v3664_v2 }
  0x90   :  { %2610 = vmatpush1.bf16.msra.mxu1 %v3668_v5  ;;  %2580 = vmatprep.subr.bf16.mxu0 %v3672_v8 }
  0x91   :  { %2612 = vmatprep.subr.bf16.mxu1 %v3676_v11 }
  0x93   :  { %2582 = vmatpush1.bf16.msra.mxu0 %v3680_v15 }
  0x94   :  { %2614 = vmatpush1.bf16.msra.mxu1 %v3684_v19  ;;  %2584 = vmatprep.subr.bf16.mxu0 %v3688_v24 }
  0x95   :  { %2616 = vmatprep.subr.bf16.mxu1 %v3692_v28 }
  0x97   :  { %2586 = vmatpush1.bf16.msra.mxu0 %v3696_v33 }
  0x98   :  { %2618 = vmatpush1.bf16.msra.mxu1 %v3700_v39  ;;  %2588 = vmatprep.subr.bf16.mxu0 %v3704_v43 }
  0x99   :  { %2620 = vmatprep.subr.bf16.mxu1 %v3708_v46 }
  0x9b   :  { %2590 = vmatpush1.bf16.msra.mxu0 %v3712_v52 }
  0x9c   :  { %2622 = vmatpush1.bf16.msra.mxu1 %v3716_v56  ;;  %2592 = vmatprep.subr.bf16.mxu0 %v3720_v60 }
  0x9d   :  { %2624 = vmatprep.subr.bf16.mxu1 %v3724_v1 }
  0x9f   :  { %2594 = vmatpush1.bf16.msra.mxu0 %v3728_v4 }
  0xa0   :  { %2626 = vmatpush1.bf16.msra.mxu1 %v3732_v6  ;;  %2628 = vmatprep.subr.bf16.mxu0 %v3615_v17 }
  0xa1   :  { %2660 = vmatprep.subr.bf16.mxu1 %v3617_v21 }
 0x155   :  { %v561_v18 = vpop.f32.mrb[0].mxu0 }
 0x156   :  { %v3139_v23 = vadd.f32 %v561_v18, %v3790_v14  ;;  %v632_v26 = vpop.f32.mrb[0].mxu1  ;;  %v563_v27 = vpop.f32.mrb[1].mxu0 }
 0x157   :  { %v3140_v30 = vadd.f32 %v563_v27, %v3794_v16  ;;  %v634_v31 = vpop.f32.mrb[1].mxu1  ;;  %v3155_v48 = vadd.f32 %v632_v26, %v3807_v44 }
 0x158   :  { %v2396_v32 = vmul.f32 -1.442695, %v3139_v23  ;;  %v3156_v41 = vadd.f32 %v634_v31, %v3801_v37 }
 0x159   :  { %v2397_v36 = vmul.f32 -1.442695, %v3140_v30 }
 0x15a   :  { %3214 = vpow2.f32 %v2396_v32  ;;  %v2398_v45 = vmul.f32 -1.442695, %v3156_v41 }
 0x15b   :  { %3216 = vpow2.f32 %v2397_v36 }
 0x15c   :  { %3218 = vpow2.f32 %v2398_v45 }
 0x15d   :  { %3220 = vtanh.f32 %v3155_v48 }
 0x164   :  { %v3215_v49 = vpop.eup %3214 }
 0x165   :  { %v3217_v51 = vpop.eup %3216  ;;  %v644_v53 = vadd.f32 1.0, %v3215_v49 }
 0x166   :  { %v650_v55 = vadd.f32 1.0, %v3217_v51  ;;  %v3219_v57 = vpop.eup %3218 }
 0x167   :  { %3222 = vrcp.f32 %v644_v53  ;;  %v3221_v59 = vpop.eup %3220  ;;  %v657_v7 = vadd.f32 1.0, %v3219_v57 }
 0x168   :  { %3224 = vrcp.f32 %v650_v55 }
 0x169   :  { %3226 = vrcp.f32 %v657_v7 }
 0x171   :  { %v3223_v62 = vpop.eup %3222 }
 0x172   :  { %v3225_v63 = vpop.eup %3224  ;;  %v661_v3 = vmul.f32 %v3223_v62, %v3221_v59 }
 0x173   :  { %v660_v18 = vmul.f32 0.0, %v3225_v63  ;;  %v3227_v23 = vpop.eup %3226 }
 0x175   :  { %v3810_v12 = vadd.f32 %v661_v3, %v660_v18 }
 0x177   :  { %3228 = vtanh.f32 %v3810_v12 }
 0x181   :  { %v3229_v26 = vpop.eup %3228 }
 0x182   :  { %v664_v27 = vmul.f32 %v3229_v26, %v3227_v23 }
 0x184   :  { %735 = vmatmul.mubr.f32.vlgmr.msra.gmra.mrb[2].mxu0 %v664_v27  ;;  %806 = vmatmul.mubr.f32.vlgmr.msra.gmra.mrb[2].mxu1 %v664_v27 }
 0x185   :  { %2630 = vmatpush1.bf16.msra.mxu0 %v3619_v22  ;;  %2662 = vmatpush1.bf16.msra.mxu1 %v3622_v25 }
 0x186   :  { %2632 = vmatprep.subr.bf16.mxu0 %v3626_v29  ;;  %2664 = vmatprep.subr.bf16.mxu1 %v3630_v34 }
 0x187   :  { %909 = vmatprep.mubr.f32.mxu0 %v3491_v0  ;;  %980 = vmatprep.mubr.f32.mxu1 %v3491_v0 }
 0x189   :  { %2634 = vmatpush1.bf16.msra.mxu0 %v3632_v35  ;;  %2666 = vmatpush1.bf16.msra.mxu1 %v3636_v38 }
 0x18a   :  { %2636 = vmatprep.subr.bf16.mxu0 %v3640_v42  ;;  %2668 = vmatprep.subr.bf16.mxu1 %v3644_v47 }
 0x18d   :  { %2638 = vmatpush1.bf16.msra.mxu0 %v3648_v50  ;;  %2670 = vmatpush1.bf16.msra.mxu1 %v3652_v54 }
 0x18e   :  { %2640 = vmatprep.subr.bf16.mxu0 %v3656_v58  ;;  %2672 = vmatprep.subr.bf16.mxu1 %v3660_v61 }
 0x191   :  { %2642 = vmatpush1.bf16.msra.mxu0 %v3664_v2  ;;  %2674 = vmatpush1.bf16.msra.mxu1 %v3668_v5 }
 0x192   :  { %2644 = vmatprep.subr.bf16.mxu0 %v3672_v8  ;;  %2676 = vmatprep.subr.bf16.mxu1 %v3676_v11 }
 0x195   :  { %2646 = vmatpush1.bf16.msra.mxu0 %v3680_v15  ;;  %2678 = vmatpush1.bf16.msra.mxu1 %v3684_v19 }
 0x196   :  { %2648 = vmatprep.subr.bf16.mxu0 %v3688_v24  ;;  %2680 = vmatprep.subr.bf16.mxu1 %v3692_v28 }
 0x199   :  { %2650 = vmatpush1.bf16.msra.mxu0 %v3696_v33  ;;  %2682 = vmatpush1.bf16.msra.mxu1 %v3700_v39 }
 0x19a   :  { %2652 = vmatprep.subr.bf16.mxu0 %v3704_v43  ;;  %2684 = vmatprep.subr.bf16.mxu1 %v3708_v46 }
 0x19d   :  { %2654 = vmatpush1.bf16.msra.mxu0 %v3712_v52  ;;  %2686 = vmatpush1.bf16.msra.mxu1 %v3716_v56 }
 0x19e   :  { %2656 = vmatprep.subr.bf16.mxu0 %v3720_v60  ;;  %2688 = vmatprep.subr.bf16.mxu1 %v3724_v1 }
 0x1a1   :  { %2658 = vmatpush1.bf16.msra.mxu0 %v3728_v4  ;;  %2690 = vmatpush1.bf16.msra.mxu1 %v3732_v6 }
 0x1a2   :  { %2692 = vmatprep.subr.bf16.mxu0 %v3615_v17  ;;  %2724 = vmatprep.subr.bf16.mxu1 %v3617_v21 }
 0x257   :  { %v736_v30 = vpop.f32.mrb[2].mxu0  ;;  %v807_v31 = vpop.f32.mrb[2].mxu1 }
 0x258   :  { %v3141_v32 = vadd.f32 %v736_v30, %v3790_v14  ;;  %v738_v36 = vpop.f32.mrb[3].mxu0  ;;  %v809_v41 = vpop.f32.mrb[3].mxu1  ;;  %v3157_v55 = vadd.f32 %v807_v31, %v3807_v44 }
 0x259   :  { %v3142_v45 = vadd.f32 %v738_v36, %v3794_v16  ;;  %v3158_v51 = vadd.f32 %v809_v41, %v3801_v37 }
 0x25a   :  { %v2399_v48 = vmul.f32 -1.442695, %v3141_v32 }
 0x25b   :  { %v2400_v49 = vmul.f32 -1.442695, %v3142_v45  ;;  %v2401_v53 = vmul.f32 -1.442695, %v3158_v51 }
 0x25c   :  { %3230 = vpow2.f32 %v2399_v48 }
 0x25d   :  { %3232 = vpow2.f32 %v2400_v49 }
 0x25e   :  { %3234 = vpow2.f32 %v2401_v53 }
 0x25f   :  { %3236 = vtanh.f32 %v3157_v55 }
 0x266   :  { %v3231_v57 = vpop.eup %3230 }
 0x267   :  { %v3233_v59 = vpop.eup %3232  ;;  %v819_v62 = vadd.f32 1.0, %v3231_v57 }
 0x268   :  { %v825_v63 = vadd.f32 1.0, %v3233_v59  ;;  %v3235_v3 = vpop.eup %3234 }
 0x269   :  { %3238 = vrcp.f32 %v819_v62  ;;  %v3237_v7 = vpop.eup %3236  ;;  %v832_v27 = vadd.f32 1.0, %v3235_v3 }
 0x26a   :  { %3240 = vrcp.f32 %v825_v63 }
 0x26b   :  { %3242 = vrcp.f32 %v832_v27 }
 0x273   :  { %v3239_v18 = vpop.eup %3238 }
 0x274   :  { %v3241_v23 = vpop.eup %3240  ;;  %v836_v26 = vmul.f32 %v3239_v18, %v3237_v7 }
 0x275   :  { %v835_v30 = vmul.f32 %v3241_v23, %v3810_v12  ;;  %v3243_v31 = vpop.eup %3242 }
 0x277   :  { %v3852_v32 = vadd.f32 %v836_v26, %v835_v30 }
 0x279   :  { %3244 = vtanh.f32 %v3852_v32 }
 0x283   :  { %v3245_v36 = vpop.eup %3244 }
 0x284   :  { %v839_v41 = vmul.f32 %v3245_v36, %v3243_v31 }
 0x286   :  { %910 = vmatmul.mubr.f32.vlgmr.msra.gmra.mrb[4].mxu0 %v839_v41  ;;  %981 = vmatmul.mubr.f32.vlgmr.msra.gmra.mrb[4].mxu1 %v839_v41 }
 0x287   :  { %2694 = vmatpush1.bf16.msra.mxu0 %v3619_v22  ;;  %2726 = vmatpush1.bf16.msra.mxu1 %v3622_v25 }
 0x288   :  { %2696 = vmatprep.subr.bf16.mxu0 %v3626_v29  ;;  %2728 = vmatprep.subr.bf16.mxu1 %v3630_v34 }
 0x289   :  { %1084 = vmatprep.mubr.f32.mxu0 %v3491_v0  ;;  %1155 = vmatprep.mubr.f32.mxu1 %v3491_v0 }
 0x28b   :  { %2698 = vmatpush1.bf16.msra.mxu0 %v3632_v35  ;;  %2730 = vmatpush1.bf16.msra.mxu1 %v3636_v38 }
 0x28c   :  { %2700 = vmatprep.subr.bf16.mxu0 %v3640_v42  ;;  %2732 = vmatprep.subr.bf16.mxu1 %v3644_v47 }
 0x28f   :  { %2702 = vmatpush1.bf16.msra.mxu0 %v3648_v50  ;;  %2734 = vmatpush1.bf16.msra.mxu1 %v3652_v54 }
 0x290   :  { %2704 = vmatprep.subr.bf16.mxu0 %v3656_v58  ;;  %2736 = vmatprep.subr.bf16.mxu1 %v3660_v61 }
 0x293   :  { %2706 = vmatpush1.bf16.msra.mxu0 %v3664_v2  ;;  %2738 = vmatpush1.bf16.msra.mxu1 %v3668_v5 }
 0x294   :  { %2708 = vmatprep.subr.bf16.mxu0 %v3672_v8  ;;  %2740 = vmatprep.subr.bf16.mxu1 %v3676_v11 }
 0x297   :  { %2710 = vmatpush1.bf16.msra.mxu0 %v3680_v15  ;;  %2742 = vmatpush1.bf16.msra.mxu1 %v3684_v19 }
 0x298   :  { %2712 = vmatprep.subr.bf16.mxu0 %v3688_v24  ;;  %2744 = vmatprep.subr.bf16.mxu1 %v3692_v28 }
 0x29b   :  { %2714 = vmatpush1.bf16.msra.mxu0 %v3696_v33  ;;  %2746 = vmatpush1.bf16.msra.mxu1 %v3700_v39 }
 0x29c   :  { %2716 = vmatprep.subr.bf16.mxu0 %v3704_v43  ;;  %2748 = vmatprep.subr.bf16.mxu1 %v3708_v46 }
 0x29f   :  { %2718 = vmatpush1.bf16.msra.mxu0 %v3712_v52  ;;  %2750 = vmatpush1.bf16.msra.mxu1 %v3716_v56 }
 0x2a0   :  { %2720 = vmatprep.subr.bf16.mxu0 %v3720_v60  ;;  %2752 = vmatprep.subr.bf16.mxu1 %v3724_v1 }
 0x2a3   :  { %2722 = vmatpush1.bf16.msra.mxu0 %v3728_v4  ;;  %2754 = vmatpush1.bf16.msra.mxu1 %v3732_v6 }
 0x2a4   :  { %2756 = vmatprep.subr.bf16.mxu0 %v3615_v17  ;;  %2788 = vmatprep.subr.bf16.mxu1 %v3617_v21 }
 0x359   :  { %v911_v12 = vpop.f32.mrb[4].mxu0  ;;  %v982_v45 = vpop.f32.mrb[4].mxu1 }
 0x35a   :  { %v3143_v48 = vadd.f32 %v911_v12, %v3790_v14  ;;  %v913_v49 = vpop.f32.mrb[5].mxu0  ;;  %v984_v51 = vpop.f32.mrb[5].mxu1  ;;  %v3159_v63 = vadd.f32 %v982_v45, %v3807_v44 }
 0x35b   :  { %v3144_v53 = vadd.f32 %v913_v49, %v3794_v16  ;;  %v3160_v59 = vadd.f32 %v984_v51, %v3801_v37 }
 0x35c   :  { %v2402_v55 = vmul.f32 -1.442695, %v3143_v48 }
 0x35d   :  { %v2403_v57 = vmul.f32 -1.442695, %v3144_v53  ;;  %v2404_v62 = vmul.f32 -1.442695, %v3160_v59 }
 0x35e   :  { %3246 = vpow2.f32 %v2402_v55 }
 0x35f   :  { %3248 = vpow2.f32 %v2403_v57 }
 0x360   :  { %3250 = vpow2.f32 %v2404_v62 }
 0x361   :  { %3252 = vtanh.f32 %v3159_v63 }
 0x368   :  { %v3247_v3 = vpop.eup %3246 }
 0x369   :  { %v3249_v7 = vpop.eup %3248  ;;  %v994_v18 = vadd.f32 1.0, %v3247_v3 }
 0x36a   :  { %v1000_v23 = vadd.f32 1.0, %v3249_v7  ;;  %v3251_v26 = vpop.eup %3250 }
 0x36b   :  { %3254 = vrcp.f32 %v994_v18  ;;  %v3253_v27 = vpop.eup %3252  ;;  %v1007_v41 = vadd.f32 1.0, %v3251_v26 }
 0x36c   :  { %3256 = vrcp.f32 %v1000_v23 }
 0x36d   :  { %3258 = vrcp.f32 %v1007_v41 }
 0x375   :  { %v3255_v30 = vpop.eup %3254 }
 0x376   :  { %v3257_v31 = vpop.eup %3256  ;;  %v1011_v36 = vmul.f32 %v3255_v30, %v3253_v27 }
 0x377   :  { %v1010_v12 = vmul.f32 %v3257_v31, %v3852_v32  ;;  %v3259_v45 = vpop.eup %3258 }
 0x379   :  { %v3894_v48 = vadd.f32 %v1011_v36, %v1010_v12 }
 0x37b   :  { %3260 = vtanh.f32 %v3894_v48 }
 0x385   :  { %v3261_v49 = vpop.eup %3260 }
 0x386   :  { %v1014_v51 = vmul.f32 %v3261_v49, %v3259_v45 }
 0x388   :  { %1085 = vmatmul.mubr.f32.vlgmr.msra.gmra.mrb[6].mxu0 %v1014_v51  ;;  %1156 = vmatmul.mubr.f32.vlgmr.msra.gmra.mrb[6].mxu1 %v1014_v51 }
 0x389   :  { %2758 = vmatpush1.bf16.msra.mxu0 %v3619_v22  ;;  %2790 = vmatpush1.bf16.msra.mxu1 %v3622_v25 }
 0x38a   :  { %2760 = vmatprep.subr.bf16.mxu0 %v3626_v29  ;;  %2792 = vmatprep.subr.bf16.mxu1 %v3630_v34 }
 0x38b   :  { %1259 = vmatprep.mubr.f32.mxu0 %v3491_v0  ;;  %1330 = vmatprep.mubr.f32.mxu1 %v3491_v0 }
 0x38d   :  { %2762 = vmatpush1.bf16.msra.mxu0 %v3632_v35  ;;  %2794 = vmatpush1.bf16.msra.mxu1 %v3636_v38 }
 0x38e   :  { %2764 = vmatprep.subr.bf16.mxu0 %v3640_v42  ;;  %2796 = vmatprep.subr.bf16.mxu1 %v3644_v47 }
 0x391   :  { %2766 = vmatpush1.bf16.msra.mxu0 %v3648_v50  ;;  %2798 = vmatpush1.bf16.msra.mxu1 %v3652_v54 }
 0x392   :  { %2768 = vmatprep.subr.bf16.mxu0 %v3656_v58  ;;  %2800 = vmatprep.subr.bf16.mxu1 %v3660_v61 }
 0x395   :  { %2770 = vmatpush1.bf16.msra.mxu0 %v3664_v2  ;;  %2802 = vmatpush1.bf16.msra.mxu1 %v3668_v5 }
 0x396   :  { %2772 = vmatprep.subr.bf16.mxu0 %v3672_v8  ;;  %2804 = vmatprep.subr.bf16.mxu1 %v3676_v11 }
 0x399   :  { %2774 = vmatpush1.bf16.msra.mxu0 %v3680_v15  ;;  %2806 = vmatpush1.bf16.msra.mxu1 %v3684_v19 }
 0x39a   :  { %2776 = vmatprep.subr.bf16.mxu0 %v3688_v24  ;;  %2808 = vmatprep.subr.bf16.mxu1 %v3692_v28 }
 0x39d   :  { %2778 = vmatpush1.bf16.msra.mxu0 %v3696_v33  ;;  %2810 = vmatpush1.bf16.msra.mxu1 %v3700_v39 }
 0x39e   :  { %2780 = vmatprep.subr.bf16.mxu0 %v3704_v43  ;;  %2812 = vmatprep.subr.bf16.mxu1 %v3708_v46 }
 0x3a1   :  { %2782 = vmatpush1.bf16.msra.mxu0 %v3712_v52  ;;  %2814 = vmatpush1.bf16.msra.mxu1 %v3716_v56 }
 0x3a2   :  { %2784 = vmatprep.subr.bf16.mxu0 %v3720_v60  ;;  %2816 = vmatprep.subr.bf16.mxu1 %v3724_v1 }
 0x3a5   :  { %2786 = vmatpush1.bf16.msra.mxu0 %v3728_v4  ;;  %2818 = vmatpush1.bf16.msra.mxu1 %v3732_v6 }
 0x3a6   :  { %2820 = vmatprep.subr.bf16.mxu0 %v3615_v17  ;;  %2852 = vmatprep.subr.bf16.mxu1 %v3617_v21 }
 0x45b   :  { %v1086_v32 = vpop.f32.mrb[6].mxu0  ;;  %v1157_v53 = vpop.f32.mrb[6].mxu1 }
 0x45c   :  { %v3145_v55 = vadd.f32 %v1086_v32, %v3790_v14  ;;  %v1088_v57 = vpop.f32.mrb[7].mxu0  ;;  %v1159_v59 = vpop.f32.mrb[7].mxu1  ;;  %v3161_v23 = vadd.f32 %v1157_v53, %v3807_v44 }
 0x45d   :  { %v3146_v62 = vadd.f32 %v1088_v57, %v3794_v16  ;;  %v3162_v7 = vadd.f32 %v1159_v59, %v3801_v37 }
 0x45e   :  { %v2405_v63 = vmul.f32 -1.442695, %v3145_v55 }
 0x45f   :  { %v2406_v3 = vmul.f32 -1.442695, %v3146_v62  ;;  %v2407_v18 = vmul.f32 -1.442695, %v3162_v7 }
 0x460   :  { %3262 = vpow2.f32 %v2405_v63 }
 0x461   :  { %3264 = vpow2.f32 %v2406_v3 }
 0x462   :  { %3266 = vpow2.f32 %v2407_v18 }
 0x463   :  { %3268 = vtanh.f32 %v3161_v23 }
 0x46a   :  { %v3263_v26 = vpop.eup %3262 }
 0x46b   :  { %v3265_v27 = vpop.eup %3264  ;;  %v1169_v30 = vadd.f32 1.0, %v3263_v26 }
 0x46c   :  { %v1175_v31 = vadd.f32 1.0, %v3265_v27  ;;  %v3267_v36 = vpop.eup %3266 }
 0x46d   :  { %3270 = vrcp.f32 %v1169_v30  ;;  %v3269_v41 = vpop.eup %3268  ;;  %v1182_v51 = vadd.f32 1.0, %v3267_v36 }
 0x46e   :  { %3272 = vrcp.f32 %v1175_v31 }
 0x46f   :  { %3274 = vrcp.f32 %v1182_v51 }
 0x477   :  { %v3271_v12 = vpop.eup %3270 }
 0x478   :  { %v3273_v45 = vpop.eup %3272  ;;  %v1186_v49 = vmul.f32 %v3271_v12, %v3269_v41 }
 0x479   :  { %v1185_v32 = vmul.f32 %v3273_v45, %v3894_v48  ;;  %v3275_v53 = vpop.eup %3274 }
 0x47b   :  { %v3936_v55 = vadd.f32 %v1186_v49, %v1185_v32 }
 0x47d   :  { %3276 = vtanh.f32 %v3936_v55 }
 0x487   :  { %v3277_v57 = vpop.eup %3276 }
 0x488   :  { %v1189_v59 = vmul.f32 %v3277_v57, %v3275_v53 }
 0x48a   :  { %1260 = vmatmul.mubr.f32.vlgmr.msra.gmra.mrb[8].mxu0 %v1189_v59  ;;  %1331 = vmatmul.mubr.f32.vlgmr.msra.gmra.mrb[8].mxu1 %v1189_v59 }
 0x48b   :  { %2822 = vmatpush1.bf16.msra.mxu0 %v3619_v22  ;;  %2854 = vmatpush1.bf16.msra.mxu1 %v3622_v25 }
 0x48c   :  { %2824 = vmatprep.subr.bf16.mxu0 %v3626_v29  ;;  %2856 = vmatprep.subr.bf16.mxu1 %v3630_v34 }
 0x48d   :  { %1434 = vmatprep.mubr.f32.mxu0 %v3491_v0  ;;  %1505 = vmatprep.mubr.f32.mxu1 %v3491_v0 }
 0x48f   :  { %2826 = vmatpush1.bf16.msra.mxu0 %v3632_v35  ;;  %2858 = vmatpush1.bf16.msra.mxu1 %v3636_v38 }
 0x490   :  { %2828 = vmatprep.subr.bf16.mxu0 %v3640_v42  ;;  %2860 = vmatprep.subr.bf16.mxu1 %v3644_v47 }
 0x493   :  { %2830 = vmatpush1.bf16.msra.mxu0 %v3648_v50  ;;  %2862 = vmatpush1.bf16.msra.mxu1 %v3652_v54 }
 0x494   :  { %2832 = vmatprep.subr.bf16.mxu0 %v3656_v58  ;;  %2864 = vmatprep.subr.bf16.mxu1 %v3660_v61 }
 0x497   :  { %2834 = vmatpush1.bf16.msra.mxu0 %v3664_v2  ;;  %2866 = vmatpush1.bf16.msra.mxu1 %v3668_v5 }
 0x498   :  { %2836 = vmatprep.subr.bf16.mxu0 %v3672_v8  ;;  %2868 = vmatprep.subr.bf16.mxu1 %v3676_v11 }
 0x49b   :  { %2838 = vmatpush1.bf16.msra.mxu0 %v3680_v15  ;;  %2870 = vmatpush1.bf16.msra.mxu1 %v3684_v19 }
 0x49c   :  { %2840 = vmatprep.subr.bf16.mxu0 %v3688_v24  ;;  %2872 = vmatprep.subr.bf16.mxu1 %v3692_v28 }
 0x49f   :  { %2842 = vmatpush1.bf16.msra.mxu0 %v3696_v33  ;;  %2874 = vmatpush1.bf16.msra.mxu1 %v3700_v39 }
 0x4a0   :  { %2844 = vmatprep.subr.bf16.mxu0 %v3704_v43  ;;  %2876 = vmatprep.subr.bf16.mxu1 %v3708_v46 }
 0x4a3   :  { %2846 = vmatpush1.bf16.msra.mxu0 %v3712_v52  ;;  %2878 = vmatpush1.bf16.msra.mxu1 %v3716_v56 }
 0x4a4   :  { %2848 = vmatprep.subr.bf16.mxu0 %v3720_v60  ;;  %2880 = vmatprep.subr.bf16.mxu1 %v3724_v1 }
 0x4a7   :  { %2850 = vmatpush1.bf16.msra.mxu0 %v3728_v4  ;;  %2882 = vmatpush1.bf16.msra.mxu1 %v3732_v6 }
 0x4a8   :  { %2884 = vmatprep.subr.bf16.mxu0 %v3615_v17  ;;  %2916 = vmatprep.subr.bf16.mxu1 %v3617_v21 }
 0x55d   :  { %v1261_v48 = vpop.f32.mrb[8].mxu0  ;;  %v1332_v62 = vpop.f32.mrb[8].mxu1 }
 0x55e   :  { %v3147_v63 = vadd.f32 %v1261_v48, %v3790_v14  ;;  %v1263_v3 = vpop.f32.mrb[9].mxu0  ;;  %v1334_v7 = vpop.f32.mrb[9].mxu1  ;;  %v3163_v31 = vadd.f32 %v1332_v62, %v3807_v44 }
 0x55f   :  { %v3148_v18 = vadd.f32 %v1263_v3, %v3794_v16  ;;  %v3164_v27 = vadd.f32 %v1334_v7, %v3801_v37 }
 0x560   :  { %v2408_v23 = vmul.f32 -1.442695, %v3147_v63 }
 0x561   :  { %v2409_v26 = vmul.f32 -1.442695, %v3148_v18  ;;  %v2410_v30 = vmul.f32 -1.442695, %v3164_v27 }
 0x562   :  { %3278 = vpow2.f32 %v2408_v23 }
 0x563   :  { %3280 = vpow2.f32 %v2409_v26 }
 0x564   :  { %3282 = vpow2.f32 %v2410_v30 }
 0x565   :  { %3284 = vtanh.f32 %v3163_v31 }
 0x56c   :  { %v3279_v36 = vpop.eup %3278 }
 0x56d   :  { %v3281_v41 = vpop.eup %3280  ;;  %v1344_v12 = vadd.f32 1.0, %v3279_v36 }
 0x56e   :  { %v1350_v45 = vadd.f32 1.0, %v3281_v41  ;;  %v3283_v49 = vpop.eup %3282 }
 0x56f   :  { %3286 = vrcp.f32 %v1344_v12  ;;  %v3285_v51 = vpop.eup %3284  ;;  %v1357_v59 = vadd.f32 1.0, %v3283_v49 }
 0x570   :  { %3288 = vrcp.f32 %v1350_v45 }
 0x571   :  { %3290 = vrcp.f32 %v1357_v59 }
 0x579   :  { %v3287_v32 = vpop.eup %3286 }
 0x57a   :  { %v3289_v53 = vpop.eup %3288  ;;  %v1361_v57 = vmul.f32 %v3287_v32, %v3285_v51 }
 0x57b   :  { %v1360_v48 = vmul.f32 %v3289_v53, %v3936_v55  ;;  %v3291_v62 = vpop.eup %3290 }
 0x57d   :  { %v3978_v63 = vadd.f32 %v1361_v57, %v1360_v48 }
 0x57f   :  { %3292 = vtanh.f32 %v3978_v63 }
 0x589   :  { %v3293_v3 = vpop.eup %3292 }
 0x58a   :  { %v1364_v7 = vmul.f32 %v3293_v3, %v3291_v62 }
 0x58c   :  { %1435 = vmatmul.mubr.f32.vlgmr.msra.gmra.mrb[10].mxu0 %v1364_v7  ;;  %1506 = vmatmul.mubr.f32.vlgmr.msra.gmra.mrb[10].mxu1 %v1364_v7 }
 0x58d   :  { %2886 = vmatpush1.bf16.msra.mxu0 %v3619_v22  ;;  %2918 = vmatpush1.bf16.msra.mxu1 %v3622_v25 }
 0x58e   :  { %2888 = vmatprep.subr.bf16.mxu0 %v3626_v29  ;;  %2920 = vmatprep.subr.bf16.mxu1 %v3630_v34 }
 0x58f   :  { %1609 = vmatprep.mubr.f32.mxu0 %v3491_v0  ;;  %1680 = vmatprep.mubr.f32.mxu1 %v3491_v0 }
 0x591   :  { %2890 = vmatpush1.bf16.msra.mxu0 %v3632_v35  ;;  %2922 = vmatpush1.bf16.msra.mxu1 %v3636_v38 }
 0x592   :  { %2892 = vmatprep.subr.bf16.mxu0 %v3640_v42  ;;  %2924 = vmatprep.subr.bf16.mxu1 %v3644_v47 }
 0x595   :  { %2894 = vmatpush1.bf16.msra.mxu0 %v3648_v50  ;;  %2926 = vmatpush1.bf16.msra.mxu1 %v3652_v54 }
 0x596   :  { %2896 = vmatprep.subr.bf16.mxu0 %v3656_v58  ;;  %2928 = vmatprep.subr.bf16.mxu1 %v3660_v61 }
 0x599   :  { %2898 = vmatpush1.bf16.msra.mxu0 %v3664_v2  ;;  %2930 = vmatpush1.bf16.msra.mxu1 %v3668_v5 }
 0x59a   :  { %2900 = vmatprep.subr.bf16.mxu0 %v3672_v8  ;;  %2932 = vmatprep.subr.bf16.mxu1 %v3676_v11 }
 0x59d   :  { %2902 = vmatpush1.bf16.msra.mxu0 %v3680_v15  ;;  %2934 = vmatpush1.bf16.msra.mxu1 %v3684_v19 }
 0x59e   :  { %2904 = vmatprep.subr.bf16.mxu0 %v3688_v24  ;;  %2936 = vmatprep.subr.bf16.mxu1 %v3692_v28 }
 0x5a1   :  { %2906 = vmatpush1.bf16.msra.mxu0 %v3696_v33  ;;  %2938 = vmatpush1.bf16.msra.mxu1 %v3700_v39 }
 0x5a2   :  { %2908 = vmatprep.subr.bf16.mxu0 %v3704_v43  ;;  %2940 = vmatprep.subr.bf16.mxu1 %v3708_v46 }
 0x5a5   :  { %2910 = vmatpush1.bf16.msra.mxu0 %v3712_v52  ;;  %2942 = vmatpush1.bf16.msra.mxu1 %v3716_v56 }
 0x5a6   :  { %2912 = vmatprep.subr.bf16.mxu0 %v3720_v60  ;;  %2944 = vmatprep.subr.bf16.mxu1 %v3724_v1 }
 0x5a9   :  { %2914 = vmatpush1.bf16.msra.mxu0 %v3728_v4  ;;  %2946 = vmatpush1.bf16.msra.mxu1 %v3732_v6 }
 0x5aa   :  { %2948 = vmatprep.subr.bf16.mxu0 %v3615_v17  ;;  %2980 = vmatprep.subr.bf16.mxu1 %v3617_v21 }
 0x65f   :  { %v1436_v55 = vpop.f32.mrb[10].mxu0  ;;  %v1507_v18 = vpop.f32.mrb[10].mxu1 }
 0x660   :  { %v3149_v23 = vadd.f32 %v1436_v55, %v3790_v14  ;;  %v1438_v26 = vpop.f32.mrb[11].mxu0  ;;  %v1509_v27 = vpop.f32.mrb[11].mxu1  ;;  %v3165_v45 = vadd.f32 %v1507_v18, %v3807_v44 }
 0x661   :  { %v3150_v30 = vadd.f32 %v1438_v26, %v3794_v16  ;;  %v3166_v41 = vadd.f32 %v1509_v27, %v3801_v37  ;;  %v1914_v26 = vld [vmem:[#allocation11] sm:$0xff] }
 0x662   :  { %v2411_v31 = vmul.f32 -1.442695, %v3149_v23  ;;  %v1918_v27 = vld [vmem:[#allocation11 + $0x20] sm:$0xff] }
 0x663   :  { %v2412_v36 = vmul.f32 -1.442695, %v3150_v30  ;;  %v2413_v12 = vmul.f32 -1.442695, %v3166_v41  ;;  %v1920_v41 = vld [vmem:[#allocation11 + $0x30] sm:$0xff] }
 0x664   :  { %3294 = vpow2.f32 %v2411_v31  ;;  %v3013_v31 = vpack.c.bf16 %v1918_v27, %v1914_v26  ;;  %v1959_v26 = vld [vmem:[#allocation11 + $0x168] sm:$0xff]  ;;  %v1957_v27 = vld [vmem:[#allocation11 + $0x158] sm:$0xff] }
 0x665   :  { %3296 = vpow2.f32 %v2412_v36  ;;  %v1916_v36 = vld [vmem:[#allocation11 + $0x10] sm:$0xff] }
 0x666   :  { %3298 = vpow2.f32 %v2413_v12  ;;  %v3045_v12 = vpack.c.bf16 %v1920_v41, %v1916_v36 }
 0x667   :  { %3300 = vtanh.f32 %v3165_v45  ;;  %v1923_v45 = vld [vmem:[#allocation11 + $0x48] sm:$0xff] }
 0x66e   :  { %v3295_v17 = vpop.eup %3294 }
 0x66f   :  { %v3297_v49 = vpop.eup %3296  ;;  %v1519_v21 = vadd.f32 1.0, %v3295_v17  ;;  %v1927_v17 = vld [vmem:[#allocation11 + $0x68] sm:$0xff] }
 0x670   :  { %v1525_v51 = vadd.f32 1.0, %v3297_v49  ;;  %v3299_v32 = vpop.eup %3298  ;;  %v1925_v49 = vld [vmem:[#allocation11 + $0x58] sm:$0xff] }
 0x671   :  { %3302 = vrcp.f32 %v1519_v21  ;;  %v3301_v53 = vpop.eup %3300  ;;  %v1532_v62 = vadd.f32 1.0, %v3299_v32  ;;  %v1929_v21 = vld [vmem:[#allocation11 + $0x78] sm:$0xff]  ;;  %v1926_v32 = vld [vmem:[#allocation11 + $0x60] sm:$0xff] }
 0x672   :  { %3304 = vrcp.f32 %v1525_v51  ;;  %v1922_v51 = vld [vmem:[#allocation11 + $0x40] sm:$0xff] }
 0x673   :  { %3306 = vrcp.f32 %v1532_v62  ;;  %v1931_v62 = vld [vmem:[#allocation11 + $0x88] sm:$0xff] }
 0x67b   :  { %v3303_v57 = vpop.eup %3302 }
 0x67c   :  { %v3305_v59 = vpop.eup %3304  ;;  %v1536_v48 = vmul.f32 %v3303_v57, %v3301_v53  ;;  %v3047_v53 = vpack.c.bf16 %v1929_v21, %v1925_v49  ;;  %v3017_v57 = vpack.c.bf16 %v1926_v32, %v1922_v51  ;;  %v1963_v21 = vld [vmem:[#allocation11 + $0x188] sm:$0xff]  ;;  %v1965_v32 = vld [vmem:[#allocation11 + $0x198] sm:$0xff] }
 0x67d   :  { %v1535_v3 = vmul.f32 %v3305_v59, %v3978_v63  ;;  %v3307_v55 = vpop.eup %3306  ;;  %v1921_v63 = vld [vmem:[#allocation11 + $0x38] sm:$0xff]  ;;  %v1924_v59 = vld [vmem:[#allocation11 + $0x50] sm:$0xff]  ;;  %v1967_v51 = vld [vmem:[#allocation11 + $0x1a8] sm:$0xff] }
 0x67f   :  { %v4020_v7 = vadd.f32 %v1536_v48, %v1535_v3  ;;  %v1928_v48 = vld [vmem:[#allocation11 + $0x70] sm:$0xff] }
 0x680   :  { %v3049_v3 = vpack.c.bf16 %v1928_v48, %v1924_v59  ;;  %v3035_v48 = vpack.c.bf16 %v1967_v51, %v1963_v21 }
 0x681   :  { %3308 = vtanh.f32 %v4020_v7 }
 0x68b   :  { %v3309_v18 = vpop.eup %3308 }
 0x68c   :  { %v1539_v23 = vmul.f32 %v3309_v18, %v3307_v55  ;;  %v1933_v55 = vld [vmem:[#allocation11 + $0x98] sm:$0xff] }
 0x68d   :  { %v1937_v18 = vld [vmem:[#allocation11 + $0xb8] sm:$0xff] }
 0x68e   :  { %1610 = vmatmul.mubr.f32.vlgmr.msra.gmra.mrb[12].mxu0 %v1539_v23  ;;  %1681 = vmatmul.mubr.f32.vlgmr.msra.gmra.mrb[12].mxu1 %v1539_v23 }
 0x68f   :  { %2950 = vmatpush1.bf16.msra.mxu0 %v3619_v22  ;;  %2982 = vmatpush1.bf16.msra.mxu1 %v3622_v25 }
 0x690   :  { %2952 = vmatprep.subr.bf16.mxu0 %v3626_v29  ;;  %2984 = vmatprep.subr.bf16.mxu1 %v3630_v34 }
 0x691   :  { %1784 = vmatprep.mubr.f32.mxu0 %v3491_v0  ;;  %1855 = vmatprep.mubr.f32.mxu1 %v3491_v0 }
 0x693   :  { %2954 = vmatpush1.bf16.msra.mxu0 %v3632_v35  ;;  %2986 = vmatpush1.bf16.msra.mxu1 %v3636_v38 }
 0x694   :  { %2956 = vmatprep.subr.bf16.mxu0 %v3640_v42  ;;  %2988 = vmatprep.subr.bf16.mxu1 %v3644_v47 }
 0x697   :  { %2958 = vmatpush1.bf16.msra.mxu0 %v3648_v50  ;;  %2990 = vmatpush1.bf16.msra.mxu1 %v3652_v54 }
 0x698   :  { %2960 = vmatprep.subr.bf16.mxu0 %v3656_v58  ;;  %2992 = vmatprep.subr.bf16.mxu1 %v3660_v61 }
 0x69b   :  { %2962 = vmatpush1.bf16.msra.mxu0 %v3664_v2  ;;  %2994 = vmatpush1.bf16.msra.mxu1 %v3668_v5 }
 0x69c   :  { %2964 = vmatprep.subr.bf16.mxu0 %v3672_v8  ;;  %2996 = vmatprep.subr.bf16.mxu1 %v3676_v11 }
 0x69f   :  { %2966 = vmatpush1.bf16.msra.mxu0 %v3680_v15  ;;  %2998 = vmatpush1.bf16.msra.mxu1 %v3684_v19 }
 0x6a0   :  { %2968 = vmatprep.subr.bf16.mxu0 %v3688_v24  ;;  %3000 = vmatprep.subr.bf16.mxu1 %v3692_v28 }
 0x6a3   :  { %2970 = vmatpush1.bf16.msra.mxu0 %v3696_v33  ;;  %3002 = vmatpush1.bf16.msra.mxu1 %v3700_v39 }
 0x6a4   :  { %2972 = vmatprep.subr.bf16.mxu0 %v3704_v43  ;;  %3004 = vmatprep.subr.bf16.mxu1 %v3708_v46 }
 0x6a7   :  { %2974 = vmatpush1.bf16.msra.mxu0 %v3712_v52  ;;  %3006 = vmatpush1.bf16.msra.mxu1 %v3716_v56 }
 0x6a8   :  { %2976 = vmatprep.subr.bf16.mxu0 %v3720_v60  ;;  %3008 = vmatprep.subr.bf16.mxu1 %v3724_v1  ;;  %v1915_v60 = vld [vmem:[#allocation11 + $0x8] sm:$0xff] }
 0x6a9   :  { %v1919_v1 = vld [vmem:[#allocation11 + $0x28] sm:$0xff] }
 0x6ab   :  { %2978 = vmatpush1.bf16.msra.mxu0 %v3728_v4  ;;  %3010 = vmatpush1.bf16.msra.mxu1 %v3732_v6  ;;  %v1917_v4 = vld [vmem:[#allocation11 + $0x18] sm:$0xff]  ;;  %v3011_v6 = vpack.c.bf16 %v1919_v1, %v1915_v60  ;;  %v1950_v60 = vld [vmem:[#allocation11 + $0x120] sm:$0xff] }
 0x6ac   :  { %v3043_v30 = vpack.c.bf16 %v1921_v63, %v1917_v4  ;;  %v1948_v4 = vld [vmem:[#allocation11 + $0x110] sm:$0xff]  ;;  %v1955_v63 = vld [vmem:[#allocation11 + $0x148] sm:$0xff] }
 0x6ad   :  { %3012 = vmatprep.subr.bf16.mxu0 %v3011_v6  ;;  %v1952_v6 = vld [vmem:[#allocation11 + $0x130] sm:$0xff]  ;;  %v3031_v41 = vpack.c.bf16 %v1959_v26, %v1955_v63 }
 0x6ae   :  { %3044 = vmatprep.subr.bf16.mxu1 %v3043_v30  ;;  %v1961_v30 = vld [vmem:[#allocation11 + $0x178] sm:$0xff]  ;;  %v3061_v36 = vpack.c.bf16 %v1952_v6, %v1948_v4 }
 0x6af   :  { %v3063_v49 = vpack.c.bf16 %v1961_v30, %v1957_v27 }
 0x761   :  { %v1611_v22 = vpop.f32.mrb[12].mxu0  ;;  %v1682_v25 = vpop.f32.mrb[12].mxu1 }
 0x762   :  { %v3151_v29 = vadd.f32 %v1611_v22, %v3790_v14  ;;  %v1613_v34 = vpop.f32.mrb[13].mxu0  ;;  %v1684_v35 = vpop.f32.mrb[13].mxu1  ;;  %v3167_v58 = vadd.f32 %v1682_v25, %v3807_v44  ;;  %v3051_v22 = vpack.c.bf16 %v1937_v18, %v1933_v55  ;;  %v1930_v25 = vld [vmem:[#allocation11 + $0x80] sm:$0xff]  ;;  %v1968_v18 = vld [vmem:[#allocation11 + $0x1b0] sm:$0xff] }
 0x763   :  { %v3152_v38 = vadd.f32 %v1613_v34, %v3794_v16  ;;  %v3168_v50 = vadd.f32 %v1684_v35, %v3801_v37  ;;  %v1932_v34 = vld [vmem:[#allocation11 + $0x90] sm:$0xff] }
 0x764   :  { %v2414_v42 = vmul.f32 -1.442695, %v3151_v29  ;;  %v1934_v29 = vld [vmem:[#allocation11 + $0xa0] sm:$0xff] }
 0x765   :  { %v2415_v47 = vmul.f32 -1.442695, %v3152_v38  ;;  %v2416_v54 = vmul.f32 -1.442695, %v3168_v50  ;;  %v3021_v35 = vpack.c.bf16 %v1934_v29, %v1930_v25  ;;  %v1936_v38 = vld [vmem:[#allocation11 + $0xb0] sm:$0xff]  ;;  %v1973_v25 = vld [vmem:[#allocation11 + $0x1d8] sm:$0xff] }
 0x766   :  { %3310 = vpow2.f32 %v2414_v42  ;;  %v1939_v42 = vld [vmem:[#allocation11 + $0xc8] sm:$0xff]  ;;  %v3053_v50 = vpack.c.bf16 %v1936_v38, %v1932_v34  ;;  %v1977_v29 = vld [vmem:[#allocation11 + $0x1f8] sm:$0xff] }
 0x767   :  { %3312 = vpow2.f32 %v2415_v47  ;;  %v1943_v47 = vld [vmem:[#allocation11 + $0xe8] sm:$0xff] }
 0x768   :  { %3314 = vpow2.f32 %v2416_v54  ;;  %v3023_v54 = vpack.c.bf16 %v1943_v47, %v1939_v42  ;;  %v1970_v42 = vld [vmem:[#allocation11 + $0x1c0] sm:$0xff] }
 0x769   :  { %3316 = vtanh.f32 %v3167_v58  ;;  %v1941_v58 = vld [vmem:[#allocation11 + $0xd8] sm:$0xff]  ;;  %v1974_v47 = vld [vmem:[#allocation11 + $0x1e0] sm:$0xff] }
 0x770   :  { %v3311_v61 = vpop.eup %3310 }
 0x771   :  { %v3313_v2 = vpop.eup %3312  ;;  %v1694_v5 = vadd.f32 1.0, %v3311_v61  ;;  %v1945_v61 = vld [vmem:[#allocation11 + $0xf8] sm:$0xff] }
 0x772   :  { %v1700_v8 = vadd.f32 1.0, %v3313_v2  ;;  %v3315_v11 = vpop.eup %3314  ;;  %v1938_v2 = vld [vmem:[#allocation11 + $0xc0] sm:$0xff] }
 0x773   :  { %3318 = vrcp.f32 %v1694_v5  ;;  %v3317_v15 = vpop.eup %3316  ;;  %v1707_v33 = vadd.f32 1.0, %v3315_v11  ;;  %v3055_v5 = vpack.c.bf16 %v1945_v61, %v1941_v58  ;;  %v1940_v11 = vld [vmem:[#allocation11 + $0xd0] sm:$0xff]  ;;  %v3041_v61 = vpack.c.bf16 %v1974_v47, %v1970_v42  ;;  %v2202_v42 = vld [vmem:[#allocation13 + $0x198] sm:$0xff] }
 0x774   :  { %3320 = vrcp.f32 %v1700_v8  ;;  %v1942_v8 = vld [vmem:[#allocation11 + $0xe0] sm:$0xff]  ;;  %v1976_v58 = vld [vmem:[#allocation11 + $0x1f0] sm:$0xff] }
 0x775   :  { %3322 = vrcp.f32 %v1707_v33  ;;  %v1949_v33 = vld [vmem:[#allocation11 + $0x118] sm:$0xff] }
 0x77d   :  { %v3319_v19 = vpop.eup %3318 }
 0x77e   :  { %v3321_v24 = vpop.eup %3320  ;;  %v1711_v28 = vmul.f32 %v3319_v19, %v3317_v15  ;;  %v1944_v15 = vld [vmem:[#allocation11 + $0xf0] sm:$0xff]  ;;  %v3025_v19 = vpack.c.bf16 %v1942_v8, %v1938_v2  ;;  %v2168_v8 = vld [vmem:[#allocation13 + $0x88] sm:$0xff] }
 0x77f   :  { %v1710_v39 = vmul.f32 %v3321_v24, %v4020_v7  ;;  %v3323_v46 = vpop.eup %3322  ;;  %v1935_v7 = vld [vmem:[#allocation11 + $0xa8] sm:$0xff] }
 0x780   :  { %v3019_v23 = vpack.c.bf16 %v1935_v7, %v1931_v62  ;;  %v1947_v24 = vld [vmem:[#allocation11 + $0x108] sm:$0xff]  ;;  %v1962_v62 = vld [vmem:[#allocation11 + $0x180] sm:$0xff]  ;;  %v1964_v7 = vld [vmem:[#allocation11 + $0x190] sm:$0xff] }
 0x781   :  { %v4060_v43 = vadd.f32 %v1711_v28, %v1710_v39  ;;  %v1951_v28 = vld [vmem:[#allocation11 + $0x128] sm:$0xff]  ;;  %v3057_v39 = vpack.c.bf16 %v1944_v15, %v1940_v11  ;;  %v2199_v11 = vld [vmem:[#allocation13 + $0x180] sm:$0xff] }
 0x783   :  { %3324 = vtanh.f32 %v4060_v43 }
 0x78d   :  { %v3325_v52 = vpop.eup %3324 }
 0x78e   :  { %v1714_v56 = vmul.f32 %v3325_v52, %v3323_v46  ;;  %v3027_v46 = vpack.c.bf16 %v1951_v28, %v1947_v24  ;;  %v1953_v52 = vld [vmem:[#allocation11 + $0x138] sm:$0xff] }
 0x78f   :  { %v3059_v1 = vpack.c.bf16 %v1953_v52, %v1949_v33 }
 0x790   :  { %1785 = vmatmul.mubr.f32.vlgmr.msra.gmra.mrb[14].mxu0 %v1714_v56  ;;  %1856 = vmatmul.mubr.f32.vlgmr.msra.gmra.mrb[14].mxu1 %v1714_v56  ;;  %v1946_v56 = vld [vmem:[#allocation11 + $0x100] sm:$0xff] }
 0x791   :  { %2069 = vmatprep.mubr.f32.mxu0 %v3491_v0  ;;  %2140 = vmatprep.mubr.f32.mxu1 %v3491_v0  ;;  %v3015_v0 = vpack.c.bf16 %v1927_v17, %v1923_v45  ;;  %v1958_v45 = vld [vmem:[#allocation11 + $0x160] sm:$0xff]  ;;  %v1956_v17 = vld [vmem:[#allocation11 + $0x150] sm:$0xff] }
 0x792   :  { %3014 = vmatpush1.bf16.msra.mxu0 %v3013_v31  ;;  %3046 = vmatpush1.bf16.msra.mxu1 %v3045_v12  ;;  %v3029_v31 = vpack.c.bf16 %v1950_v60, %v1946_v56  ;;  %v1954_v12 = vld [vmem:[#allocation11 + $0x140] sm:$0xff] }
 0x793   :  { %3016 = vmatprep.subr.bf16.mxu0 %v3015_v0  ;;  %3048 = vmatprep.subr.bf16.mxu1 %v3047_v53  ;;  %v1960_v0 = vld [vmem:[#allocation11 + $0x170] sm:$0xff]  ;;  %v1969_v53 = vld [vmem:[#allocation11 + $0x1b8] sm:$0xff] }
 0x794   :  { %v3065_v59 = vpack.c.bf16 %v1960_v0, %v1956_v17  ;;  %v3067_v55 = vpack.c.bf16 %v1969_v53, %v1965_v32 }
 0x796   :  { %3018 = vmatpush1.bf16.msra.mxu0 %v3017_v57  ;;  %3050 = vmatpush1.bf16.msra.mxu1 %v3049_v3  ;;  %v3033_v57 = vpack.c.bf16 %v1958_v45, %v1954_v12  ;;  %v1966_v3 = vld [vmem:[#allocation11 + $0x1a0] sm:$0xff] }
 0x797   :  { %3020 = vmatprep.subr.bf16.mxu0 %v3019_v23  ;;  %3052 = vmatprep.subr.bf16.mxu1 %v3051_v22  ;;  %v1971_v23 = vld [vmem:[#allocation11 + $0x1c8] sm:$0xff]  ;;  %v3037_v34 = vpack.c.bf16 %v1966_v3, %v1962_v62 }
 0x798   :  { %v1975_v22 = vld [vmem:[#allocation11 + $0x1e8] sm:$0xff] }
 0x799   :  { %v3039_v38 = vpack.c.bf16 %v1975_v22, %v1971_v23  ;;  %v2152_v23 = vld [vmem:[#allocation13 + $0x8] sm:$0xff]  ;;  %v2183_v22 = vld [vmem:[#allocation13 + $0x100] sm:$0xff] }
 0x79a   :  { %3022 = vmatpush1.bf16.msra.mxu0 %v3021_v35  ;;  %3054 = vmatpush1.bf16.msra.mxu1 %v3053_v50  ;;  %v3069_v35 = vpack.c.bf16 %v1968_v18, %v1964_v7  ;;  %v3071_v50 = vpack.c.bf16 %v1977_v29, %v1973_v25  ;;  %v2184_v25 = vld [vmem:[#allocation13 + $0x108] sm:$0xff]  ;;  %v2169_v29 = vld [vmem:[#allocation13 + $0x90] sm:$0xff] }
 0x79b   :  { %3024 = vmatprep.subr.bf16.mxu0 %v3023_v54  ;;  %3056 = vmatprep.subr.bf16.mxu1 %v3055_v5  ;;  %v1972_v54 = vld [vmem:[#allocation11 + $0x1d0] sm:$0xff]  ;;  %v2167_v5 = vld [vmem:[#allocation13 + $0x80] sm:$0xff] }
 0x79c   :  { %v3073_v2 = vpack.c.bf16 %v1976_v58, %v1972_v54  ;;  %v3075_v15 = vpack.c.bf16 %v2168_v8, %v2167_v5  ;;  %v3109_v58 = vpack.c.bf16 %v2184_v25, %v2183_v22  ;;  %v2161_v25 = vld [vmem:[#allocation13 + $0x50] sm:$0xff] }
 0x79e   :  { %3026 = vmatpush1.bf16.msra.mxu0 %v3025_v19  ;;  %3058 = vmatpush1.bf16.msra.mxu1 %v3057_v39  ;;  %v2200_v19 = vld [vmem:[#allocation13 + $0x188] sm:$0xff] }
 0x79f   :  { %3028 = vmatprep.subr.bf16.mxu0 %v3027_v46  ;;  %3060 = vmatprep.subr.bf16.mxu1 %v3059_v1  ;;  %v3107_v24 = vpack.c.bf16 %v2200_v19, %v2199_v11  ;;  %v2185_v11 = vld [vmem:[#allocation13 + $0x110] sm:$0xff]  ;;  %v2171_v19 = vld [vmem:[#allocation13 + $0xa0] sm:$0xff] }
 0x7a2   :  { %3030 = vmatpush1.bf16.msra.mxu0 %v3029_v31  ;;  %3062 = vmatpush1.bf16.msra.mxu1 %v3061_v36 }
 0x7a3   :  { %3032 = vmatprep.subr.bf16.mxu0 %v3031_v41  ;;  %3064 = vmatprep.subr.bf16.mxu1 %v3063_v49 }
 0x7a6   :  { %3034 = vmatpush1.bf16.msra.mxu0 %v3033_v57  ;;  %3066 = vmatpush1.bf16.msra.mxu1 %v3065_v59 }
 0x7a7   :  { %3036 = vmatprep.subr.bf16.mxu0 %v3035_v48  ;;  %3068 = vmatprep.subr.bf16.mxu1 %v3067_v55 }
 0x7aa   :  { %3038 = vmatpush1.bf16.msra.mxu0 %v3037_v34  ;;  %3070 = vmatpush1.bf16.msra.mxu1 %v3069_v35  ;;  %v2170_v35 = vld [vmem:[#allocation13 + $0x98] sm:$0xff] }
 0x7ab   :  { %3040 = vmatprep.subr.bf16.mxu0 %v3039_v38  ;;  %3072 = vmatprep.subr.bf16.mxu1 %v3071_v50  ;;  %v2201_v38 = vld [vmem:[#allocation13 + $0x190] sm:$0xff]  ;;  %v3079_v5 = vpack.c.bf16 %v2170_v35, %v2169_v29  ;;  %v2162_v29 = vld [vmem:[#allocation13 + $0x58] sm:$0xff] }
 0x7ac   :  { %v3111_v8 = vpack.c.bf16 %v2202_v42, %v2201_v38  ;;  %v2193_v38 = vld [vmem:[#allocation13 + $0x150] sm:$0xff]  ;;  %v2194_v42 = vld [vmem:[#allocation13 + $0x158] sm:$0xff] }
 0x7ae   :  { %3042 = vmatpush1.bf16.msra.mxu0 %v3041_v61  ;;  %3074 = vmatpush1.bf16.msra.mxu1 %v3073_v2  ;;  %v2153_v61 = vld [vmem:[#allocation13 + $0x10] sm:$0xff]  ;;  %v2154_v2 = vld [vmem:[#allocation13 + $0x18] sm:$0xff] }
 0x7af   :  { %3076 = vmatprep.subr.bf16.mxu0 %v3075_v15  ;;  %3108 = vmatprep.subr.bf16.mxu1 %v3107_v24  ;;  %v2186_v15 = vld [vmem:[#allocation13 + $0x118] sm:$0xff] }
 0x863   :  { %v1786_v28 = vpop.f32.mrb[14].mxu0  ;;  %v1857_v33 = vpop.f32.mrb[14].mxu1 }
 0x864   :  { %v3153_v39 = vadd.f32 %v1786_v28, %v3790_v14  ;;  %v1788_v46 = vpop.f32.mrb[15].mxu0  ;;  %v1859_v52 = vpop.f32.mrb[15].mxu1  ;;  %v3169_v63 = vadd.f32 %v1857_v33, %v3807_v44  ;;  %v2172_v28 = vld [vmem:[#allocation13 + $0xa8] sm:$0xff]  ;;  %v2203_v33 = vld [vmem:[#allocation13 + $0x1a0] sm:$0xff] }
 0x865   :  { %v3154_v56 = vadd.f32 %v1788_v46, %v3794_v16  ;;  %v3170_v4 = vadd.f32 %v1859_v52, %v3801_v37  ;;  %v3081_v46 = vpack.c.bf16 %v2154_v2, %v2153_v61  ;;  %v3113_v52 = vpack.c.bf16 %v2186_v15, %v2185_v11  ;;  %v2163_v11 = vld [vmem:[#allocation13 + $0x60] sm:$0xff]  ;;  %v2164_v15 = vld [vmem:[#allocation13 + $0x68] sm:$0xff] }
 0x866   :  { %v2417_v60 = vmul.f32 -1.442695, %v3153_v39  ;;  %v2204_v39 = vld [vmem:[#allocation13 + $0x1a8] sm:$0xff]  ;;  %v3097_v61 = vpack.c.bf16 %v2162_v29, %v2161_v25  ;;  %v3129_v2 = vpack.c.bf16 %v2194_v42, %v2193_v38 }
 0x867   :  { %v2418_v1 = vmul.f32 -1.442695, %v3154_v56  ;;  %v2419_v6 = vmul.f32 -1.442695, %v3170_v4  ;;  %v2155_v56 = vld [vmem:[#allocation13 + $0x20] sm:$0xff]  ;;  %v3115_v4 = vpack.c.bf16 %v2204_v39, %v2203_v33  ;;  %v2181_v39 = vld [vmem:[#allocation13 + $0xf0] sm:$0xff] }
 0x868   :  { %3326 = vpow2.f32 %v2417_v60  ;;  %v2156_v60 = vld [vmem:[#allocation13 + $0x28] sm:$0xff] }
 0x869   :  { %3328 = vpow2.f32 %v2418_v1  ;;  %v3083_v1 = vpack.c.bf16 %v2172_v28, %v2171_v19  ;;  %v2195_v19 = vld [vmem:[#allocation13 + $0x160] sm:$0xff]  ;;  %v2196_v28 = vld [vmem:[#allocation13 + $0x168] sm:$0xff] }
 0x86a   :  { %3330 = vpow2.f32 %v2419_v6  ;;  %v2187_v6 = vld [vmem:[#allocation13 + $0x120] sm:$0xff]  ;;  %v3133_v33 = vpack.c.bf16 %v2196_v28, %v2195_v19 }
 0x86b   :  { %3332 = vtanh.f32 %v3169_v63  ;;  %v2188_v63 = vld [vmem:[#allocation13 + $0x128] sm:$0xff] }
 0x872   :  { %v3327_v26 = vpop.eup %3326 }
 0x873   :  { %v3329_v27 = vpop.eup %3328  ;;  %v1869_v30 = vadd.f32 1.0, %v3327_v26  ;;  %v2173_v26 = vld [vmem:[#allocation13 + $0xb0] sm:$0xff] }
 0x874   :  { %v1875_v31 = vadd.f32 1.0, %v3329_v27  ;;  %v3331_v14 = vpop.eup %3330  ;;  %v2174_v27 = vld [vmem:[#allocation13 + $0xb8] sm:$0xff] }
 0x875   :  { %3334 = vrcp.f32 %v1869_v30  ;;  %v3333_v36 = vpop.eup %3332  ;;  %v1882_v45 = vadd.f32 1.0, %v3331_v14  ;;  %v2205_v30 = vld [vmem:[#allocation13 + $0x1b0] sm:$0xff]  ;;  %v3085_v14 = vpack.c.bf16 %v2156_v60, %v2155_v56  ;;  %v2214_v60 = vld [vmem:[#allocation13 + $0x1f8] sm:$0xff] }
 0x876   :  { %3336 = vrcp.f32 %v1875_v31  ;;  %v2206_v31 = vld [vmem:[#allocation13 + $0x1b8] sm:$0xff] }
 0x877   :  { %3338 = vrcp.f32 %v1882_v45  ;;  %v3119_v45 = vpack.c.bf16 %v2206_v31, %v2205_v30  ;;  %v1978_v31 = vld [vmem:[%s4101_s5] sm:$0xf] }
 0x87f   :  { %v3335_v16 = vpop.eup %3334 }
 0x880   :  { %v3337_v41 = vpop.eup %3336  ;;  %v1886_v12 = vmul.f32 %v3335_v16, %v3333_v36  ;;  %v3117_v36 = vpack.c.bf16 %v2188_v63, %v2187_v6  ;;  %v2157_v16 = vld [vmem:[#allocation13 + $0x30] sm:$0xff] }
 0x881   :  { %v1885_v17 = vmul.f32 %v3337_v41, %v4060_v43  ;;  %v3339_v44 = vpop.eup %3338  ;;  %v2151_v43 = vld [vmem:[#allocation13] sm:$0xff]  ;;  %v2158_v41 = vld [vmem:[#allocation13 + $0x38] sm:$0xff] }
 0x882   :  { %v3077_v54 = vpack.c.bf16 %v2152_v23, %v2151_v43  ;;  %v2210_v43 = vld [vmem:[#allocation13 + $0x1d8] sm:$0xff] }
 0x883   :  { %v1887_v37 = vadd.f32 %v1886_v12, %v1885_v17  ;;  %v3087_v12 = vpack.c.bf16 %v2174_v27, %v2173_v26  ;;  %v2189_v17 = vld [vmem:[#allocation13 + $0x130] sm:$0xff]  ;;  %v2198_v27 = vld [vmem:[#allocation13 + $0x178] sm:$0xff] }
 0x884   :  { %v2197_v26 = vld [vmem:[#allocation13 + $0x170] sm:$0xff] }
 0x885   :  { %3340 = vtanh.f32 %v1887_v37  ;;  %v2190_v37 = vld [vmem:[#allocation13 + $0x138] sm:$0xff]  ;;  %v3137_v30 = vpack.c.bf16 %v2198_v27, %v2197_v26 }
 0x88f   :  { %v3341_v49 = vpop.eup %3340 }
 0x890   :  { %v1889_v0 = vmul.f32 %v3341_v49, %v3339_v44  ;;  %v2175_v44 = vld [vmem:[#allocation13 + $0xc0] sm:$0xff]  ;;  %v2176_v49 = vld [vmem:[#allocation13 + $0xc8] sm:$0xff] }
 0x892   :  { %v1897_v21 = vcombine.high %v1889_v0, %v1889_v0  ;;  %v1900_v51 = vsel %vm1899_vm1, %v1889_v0, -inf  ;;  %v2207_v0 = vld [vmem:[#allocation13 + $0x1c0] sm:$0xff] }
 0x893   :  { %v1901_v32 = vrot.slane %v1900_v51, 4 }
 0x894   :  { %v1907_v53 = vsel %vm1899_vm1, %v1897_v21, -inf  ;;  %v2208_v21 = vld [vmem:[#allocation13 + $0x1c8] sm:$0xff] }
 0x895   :  { %v1902_v57 = vmax.f32 %v1900_v51, %v1901_v32  ;;  %v1908_v59 = vrot.slane %v1907_v53, 4  ;;  %v3089_v51 = vpack.c.bf16 %v2158_v41, %v2157_v16  ;;  %v3121_v32 = vpack.c.bf16 %v2190_v37, %v2189_v17 }
 0x896   :  { %v1987_v16 = vrot.slane %v1978_v31, %v128_v13  ;;  %v1995_v41 = vrot.slane %v1978_v31, %v136_v20 }
 0x897   :  { %v1903_v48 = vrot.slane %v1902_v57, 2  ;;  %v1909_v62 = vmax.f32 %v1907_v53, %v1908_v59  ;;  %v2159_v53 = vld [vmem:[#allocation13 + $0x40] sm:$0xff]  ;;  %v3091_v59 = vpack.c.bf16 %v2176_v49, %v2175_v44 }
 0x899   :  { %v1904_v3 = vmax.f32 %v1902_v57, %v1903_v48  ;;  %v1910_v7 = vrot.slane %v1909_v62, 2  ;;  %v2160_v57 = vld [vmem:[#allocation13 + $0x48] sm:$0xff]  ;;  %v3123_v48 = vpack.c.bf16 %v2208_v21, %v2207_v0 }
 0x89a   :  { %v3093_v23 = vpack.c.bf16 %v2160_v57, %v2159_v53 }
 0x89b   :  { %v1905_v55 = vrot.slane %v1904_v3, 1  ;;  %v1911_v18 = vmax.f32 %v1909_v62, %v1910_v7  ;;  %v2191_v62 = vld [vmem:[#allocation13 + $0x140] sm:$0xff]  ;;  %v2177_v7 = vld [vmem:[#allocation13 + $0xd0] sm:$0xff] }
 0x89d   :  { %v1912_v34 = vrot.slane %v1911_v18, 1  ;;  %v1906_v47 = vmax.f32 %v1904_v3, %v1905_v55  ;;  %v2192_v3 = vld [vmem:[#allocation13 + $0x148] sm:$0xff]  ;;  %v2178_v55 = vld [vmem:[#allocation13 + $0xd8] sm:$0xff] }
 0x89e   :  { %v3125_v22 = vpack.c.bf16 %v2192_v3, %v2191_v62 }
 0x89f   :  { %v1913_v50 = vmax.f32 %v1911_v18, %v1912_v34  ;;  %v2209_v18 = vld [vmem:[#allocation13 + $0x1d0] sm:$0xff]  ;;  %v3095_v34 = vpack.c.bf16 %v2178_v55, %v2177_v7 }
 0x8a0   :  { %v3127_v35 = vpack.c.bf16 %v2210_v43, %v2209_v18 }
 0x8a1   :  { %v2003_v24 = vsel %vm2002_vm2, %v1913_v50, %v1906_v47  ;;  %v2179_v47 = vld [vmem:[#allocation13 + $0xe0] sm:$0xff]  ;;  %v2180_v50 = vld [vmem:[#allocation13 + $0xe8] sm:$0xff] }
 0x8a2   :  { %2070 = vmatmul.mubr.f32.vlgmr.msra.gmra.mrb[16].mxu0 %v2003_v24  ;;  %2141 = vmatmul.mubr.f32.vlgmr.msra.gmra.mrb[16].mxu1 %v2003_v24  ;;  %v3101_v24 = vpack.c.bf16 %v2164_v15, %v2163_v11 }
 0x8a3   :  { %3078 = vmatpush3.bf16.msra.mxu0 %v3077_v54  ;;  %3110 = vmatpush3.bf16.msra.mxu1 %v3109_v58  ;;  %v2211_v54 = vld [vmem:[#allocation13 + $0x1e0] sm:$0xff]  ;;  %v2212_v58 = vld [vmem:[#allocation13 + $0x1e8] sm:$0xff] }
 0x8a4   :  { %3080 = vmatprep.subr.bf16.mxu0 %v3079_v5  ;;  %3112 = vmatprep.subr.bf16.mxu1 %v3111_v8  ;;  %v3099_v5 = vpack.c.bf16 %v2180_v50, %v2179_v47  ;;  %v3131_v8 = vpack.c.bf16 %v2212_v58, %v2211_v54 }
 0x8a7   :  { %3082 = vmatpush3.bf16.msra.mxu0 %v3081_v46  ;;  %3114 = vmatpush3.bf16.msra.mxu1 %v3113_v52  ;;  %v2182_v46 = vld [vmem:[#allocation13 + $0xf8] sm:$0xff]  ;;  %v2213_v52 = vld [vmem:[#allocation13 + $0x1f0] sm:$0xff] }
 0x8a8   :  { %3084 = vmatprep.subr.bf16.mxu0 %v3083_v1  ;;  %3116 = vmatprep.subr.bf16.mxu1 %v3115_v4  ;;  %v3103_v56 = vpack.c.bf16 %v2182_v46, %v2181_v39  ;;  %v2165_v1 = vld [vmem:[#allocation13 + $0x70] sm:$0xff]  ;;  %v2166_v4 = vld [vmem:[#allocation13 + $0x78] sm:$0xff]  ;;  %v3135_v6 = vpack.c.bf16 %v2214_v60, %v2213_v52 }
 0x8a9   :  { %v3105_v63 = vpack.c.bf16 %v2166_v4, %v2165_v1 }
 0x8ab   :  { %3086 = vmatpush3.bf16.msra.mxu0 %v3085_v14  ;;  %3118 = vmatpush3.bf16.msra.mxu1 %v3117_v36  ;;  %v1983_v14 = vrot.slane %v1978_v31, %v124_v10  ;;  %v1991_v36 = vrot.slane %v1978_v31, %v132_v40 }
 0x8ac   :  { %3088 = vmatprep.subr.bf16.mxu0 %v3087_v12  ;;  %3120 = vmatprep.subr.bf16.mxu1 %v3119_v45 }
 0x8af   :  { %3090 = vmatpush3.bf16.msra.mxu0 %v3089_v51  ;;  %3122 = vmatpush3.bf16.msra.mxu1 %v3121_v32 }
 0x8b0   :  { %3092 = vmatprep.subr.bf16.mxu0 %v3091_v59  ;;  %3124 = vmatprep.subr.bf16.mxu1 %v3123_v48 }
 0x8b3   :  { %3094 = vmatpush3.bf16.msra.mxu0 %v3093_v23  ;;  %3126 = vmatpush3.bf16.msra.mxu1 %v3125_v22 }
 0x8b4   :  { %3096 = vmatprep.subr.bf16.mxu0 %v3095_v34  ;;  %3128 = vmatprep.subr.bf16.mxu1 %v3127_v35 }
 0x8b7   :  { %3098 = vmatpush3.bf16.msra.mxu0 %v3097_v61  ;;  %3130 = vmatpush3.bf16.msra.mxu1 %v3129_v2 }
 0x8b8   :  { %3100 = vmatprep.subr.bf16.mxu0 %v3099_v5  ;;  %3132 = vmatprep.subr.bf16.mxu1 %v3131_v8 }
 0x8bb   :  { %3102 = vmatpush3.bf16.msra.mxu0 %v3101_v24  ;;  %3134 = vmatpush3.bf16.msra.mxu1 %v3133_v33 }
 0x8bc   :  { %3104 = vmatprep.subr.bf16.mxu0 %v3103_v56  ;;  %3136 = vmatprep.subr.bf16.mxu1 %v3135_v6 }
 0x8bf   :  { %3106 = vmatpush3.bf16.msra.mxu0 %v3105_v63  ;;  %3138 = vmatpush3.bf16.msra.mxu1 %v3137_v30 }
 0x975   :  { %v2071_v12 = vpop.f32.mrb[16].mxu0  ;;  %v2142_v45 = vpop.f32.mrb[16].mxu1 }
 0x976   :  { %v2072_v17 = vadd.f32 %v2071_v12, %v1983_v14  ;;  %v2143_v37 = vadd.f32 %v2142_v45, %v1991_v36  ;;  %v2073_v44 = vpop.f32.mrb[17].mxu0  ;;  %v2144_v49 = vpop.f32.mrb[17].mxu1 }
 0x977   :  { %v2074_v0 = vadd.f32 %v2073_v44, %v1987_v16  ;;  %v2145_v21 = vadd.f32 %v2144_v49, %v1995_v41 }
 0x978   :  { %v2147_v10 = vmax.f32 %v2072_v17, 0.0  ;;  %v2149_v53 = vmax.f32 %v2143_v37, 0.0 }
 0x979   :  { %v2148_v51 = vmax.f32 %v2074_v0, 0.0  ;;  %v2150_v32 = vmax.f32 %v2145_v21, 0.0 }
 0x97b   :  { %2286 = vmatprep.mubr.f32.mxu0 %v2148_v51  ;;  %2356 = vmatprep.mubr.f32.mxu1 %v2150_v32 }
 0x97c   :  { %2287 = vmatmul.mubr.f32.vlgmr.msra.gmra.mrb[18].mxu0 %v2147_v10  ;;  %2357 = vmatmul.mubr.f32.vlgmr.msra.gmra.mrb[18].mxu1 %v2149_v53 }
 0xa4f   :  { %v2453_v13 = vpop.f32.mrb[18].mxu0  ;;  %v2488_v40 = vpop.f32.mrb[18].mxu1 }
 0xa50   :  { %v2454_v20 = vpop.f32.mrb[19].mxu0  ;;  %v2489_v57 = vpop.f32.mrb[19].mxu1 }
 0xa51   :  { %v2455_v59 = vadd.f32 %v2454_v20, %v2453_v13  ;;  %v2490_v48 = vadd.f32 %v2489_v57, %v2488_v40 }
 0xa53   :  { %v2289_v62 = vadd.f32 %v2455_v59, %v2420_v9 }
 0xa55   :  { %v2359_v3 = vadd.f32 %v2490_v48, %v2289_v62 }
 0xa57   :  { %2362 = vst [vmem:[#allocation14] sm:$0x3] %v2359_v3 }
 0xa58   :  { %3463 = shalt.err (!%p3460_p2)
}
 0xa59   :  { %s3464_s7 = scalar_lea.hbm %s4104_s8, 32 }
 0xa5a   :  { %p3465_p3 = scmp.ne.s32.totalorder %s4104_s8, %s3464_s7  ;;  %p3468_p4 = scmp.lt.u32.totalorder %s3464_s7, %s4104_s8 }
 0xa5c   :  { %p3470_p5 = pnand %p3468_p4, %p3465_p3 }
 0xa5e   :  { %3473 = shalt.err (!%p3470_p5)
}
 0xa5f   :  { %2372 = dma.vmem_to_hbm [thread:$0]  %s2370_s26, 32, %s4104_s8, [#allocation7]  }
 0xa60   :  { %3480 = dma.done.wait [#allocation7], 32  }
 0xa61   :  { %3481 = vsyncadd [#allocation7], 4294967264 }
 0xa62   :  { %2376 = vsyncpa [#allocation6], 1 }
 0xa63   :  { %2377 = vsyncpa [#allocation9], 1 }
 0xa64   :  { %2378 = vsyncpa [#allocation12], 1 }
 0xa65   :  { %2379 = vsyncpa [#allocation7], 1 }

</bundles_post_ra>
